<compile_context>
chip_gen: v5e
topology: v5e:2x2
jax: 0.10.0
libtpu: 0.0.40
codegen_flags: <defaults>
</compile_context>

<pallas_src>
import jax
import jax.numpy as jnp
import numpy as np
from jax.experimental import pallas as pl
from jax.experimental.pallas import tpu as pltpu

# ----------------------------- model dims (small, consistent with forward) ---
B = 2            # batch
C = 4            # image channels
H = W = 16       # image spatial
HW = H * W
IMG_IN = C * HW  # 1024: dense 2-D image width fed to the folded matmul
L = 8            # token sequence length (max_len analogue)
E = 64           # token embedding dim (stand-in for DistilBERT hidden)
EPAD = 128       # CLS embedding padded to a full 128-lane / K=128 block
IMG_DIM = 256    # stand-in for image_feature_dim (=2048 in the original)
TXT_DIM = 128    # stand-in for text_feature_dim (=768 in the original)
HID = 512        # classifier hidden dim (hardcoded 512 in the module)
NUM_CLASSES = 4  # garbage dataset has 4 classes
VOCAB = 100      # toy vocab for the stand-in embedding table
OUT_PAD = 128    # lane-dense padded logit width; sliced to NUM_CLASSES outside


def multimodal_kernel(img_ref, emb_ref,
                      w1i_ref, w1t_ref, beff_ref,
                      w2_ref, b2_ref,
                      out_ref):
    # ---- folded layer 1: relu(img2d @ W1i_rep + emb @ W1t_pad + b_eff) -------
    # TODO(synk): pretrained ResNet50 conv stack not implemented; stand-in is
    # avgpool+flatten+linear, with the 1/HW scale, the projection, and the
    # spatial reduction all folded into the replicated (C*HW, HID) MXU weight.
    h = jnp.dot(img_ref[...], w1i_ref[...],
                preferred_element_type=jnp.float32)               # (TB, HID) f32
    # TODO(synk): pretrained DistilBERT not implemented; stand-in projects the
    # position-0 ("[CLS]") token embedding (last_hidden_state[:, 0, :]), folded
    # into the classifier.  Dropout(0.3) is identity at inference.
    h = h + jnp.dot(emb_ref[...], w1t_ref[...],
                    preferred_element_type=jnp.float32)
    h = jnp.maximum(h + beff_ref[...], 0.0)                       # bias+ReLU, f32

    # ---- classifier layer 2 into a lane-dense padded logit block -------------
    out = jnp.dot(h.astype(jnp.bfloat16), w2_ref[...],
                  preferred_element_type=jnp.float32)
    out_ref[...] = out + b2_ref[...]                              # (TB, OUT_PAD)


def fold_params(params):
    """Fold branch projections, pooling, and padding into the classifier.

    cat([pooled@w_img+b_img, emb0@w_txt+b_txt]) @ w1 + b1
      == pooled @ (w_img @ w1[:IMG_DIM]) + emb0 @ (w_txt @ w1[IMG_DIM:])
         + (b_img @ w1[:IMG_DIM] + b_txt @ w1[IMG_DIM:] + b1)
    pooled == sum_HW(img) * (1/HW), and the sum itself is folded into the MXU by
    replicating each channel's row of the folded image weight over the HW
    positions (matching a row-major (C, H, W) -> (C*HW,) flatten).
    All folds are done in f32, then cast to bf16 MXU operands once.
    """
    w1_img_part = params["w1"][:IMG_DIM]                          # (IMG_DIM, HID)
    w1_txt_part = params["w1"][IMG_DIM:]                          # (TXT_DIM, HID)

    w1_img = (params["w_img"] @ w1_img_part) * (1.0 / HW)         # (C, HID)
    w1_img_rep = jnp.repeat(w1_img, HW, axis=0)                   # (C*HW, HID)

    w1_txt = params["w_txt"] @ w1_txt_part                        # (E, HID)
    w1_txt_pad = jnp.zeros((EPAD, HID), jnp.float32).at[:E].set(w1_txt)

    b_eff = (params["b_img"] @ w1_img_part
             + params["b_txt"] @ w1_txt_part
             + params["b1"])                                      # (1, HID)

    w2_pad = jnp.zeros((HID, OUT_PAD), jnp.float32).at[:, :NUM_CLASSES].set(params["w2"])
    b2_pad = jnp.zeros((1, OUT_PAD), jnp.float32).at[:, :NUM_CLASSES].set(params["b2"])

    return {
        "w1_img_rep": w1_img_rep.astype(jnp.bfloat16),            # ~1 MiB, VMEM-resident
        "w1_txt": w1_txt_pad.astype(jnp.bfloat16),
        "b_eff": b_eff.astype(jnp.float32),
        "w2": w2_pad.astype(jnp.bfloat16),
        "b2": b2_pad,
    }


def _round_up(x, m):
    return ((x + m - 1) // m) * m


def _choose_tb(bq):
    """Batch tile: sublane-minimum for tiny batches, MXU-sized for real ones."""
    if bq < 128:
        return _round_up(max(bq, 1), 16)   # 16 covers bf16 sublane packing
    try:
        kind = jax.devices()[0].device_kind.lower()
    except Exception:  # pragma: no cover - defensive
        kind = ""
    # v5e: keep TB=128 (4x128^2 MXU, lowest HBM BW); v6e/v7x: 256 for big batches.
    if bq >= 512 and "v5" not in kind:
        return 256
    return 128


def multimodal_classifier(image, input_ids, attention_mask, params, folded=None):
    """image: (B, C, H, W) f32 NCHW; input_ids/attention_mask: (B, L) i32."""
    del attention_mask               # stand-in text branch only uses the CLS token
    if folded is None:
        folded = fold_params(params)  # in real use: precompute once per checkpoint

    bq = image.shape[0]
    tb = _choose_tb(bq)
    bpad = _round_up(bq, tb)

    # Dense 2-D bf16 image block: unmasked DMA, no 4->8 sublane padding, and the
    # spatial reduce happens inside the MXU (f32 accumulation), so bf16 is safe.
    img2d = image.reshape(bq, IMG_IN).astype(jnp.bfloat16)
    img2d = jnp.pad(img2d, ((0, bpad - bq), (0, 0)))

    # Embedding gather is data-dependent glue; done in plain JAX.  CLS token is
    # padded to 128 lanes so the kernel load is unmasked and K is a full 128.
    emb0 = jnp.take(params["emb_table"], input_ids[:, 0], axis=0)      # (B, E)
    emb0 = jnp.pad(emb0, ((0, bpad - bq), (0, EPAD - E))).astype(jnp.bfloat16)

    out = pl.pallas_call(
        multimodal_kernel,
        out_shape=jax.ShapeDtypeStruct((bpad, OUT_PAD), jnp.float32),
        grid_spec=pltpu.PrefetchScalarGridSpec(
            num_scalar_prefetch=0,
            grid=(bpad // tb,),
            in_specs=[
                pl.BlockSpec((tb, IMG_IN), lambda b: (b, 0)),        # image tile (bf16)
                pl.BlockSpec((tb, EPAD), lambda b: (b, 0)),          # CLS-emb tile
                pl.BlockSpec((IMG_IN, HID), lambda b: (0, 0)),       # replicated img W
                pl.BlockSpec((EPAD, HID), lambda b: (0, 0)),         # folded txt W
                pl.BlockSpec((1, HID), lambda b: (0, 0)),            # folded bias
                pl.BlockSpec((HID, OUT_PAD), lambda b: (0, 0)),      # padded w2
                pl.BlockSpec((1, OUT_PAD), lambda b: (0, 0)),        # padded b2
            ],
            out_specs=pl.BlockSpec((tb, OUT_PAD), lambda b: (b, 0)),
        ),
        compiler_params=pltpu.CompilerParams(
            dimension_semantics=("parallel",)),
    )(img2d, emb0, folded["w1_img_rep"], folded["w1_txt"], folded["b_eff"],
      folded["w2"], folded["b2"])

    # NOTE: padded batch rows hold garbage logits (relu(b_eff)@w2 + b2); always
    # slice before any reduction over the batch.
    return out[:bq, :NUM_CLASSES]


def init_params(key):
    ks = jax.random.split(key, 10)
    def nrm(k, shape, scale):
        return jax.random.normal(k, shape, jnp.float32) * scale
    return {
        "emb_table": nrm(ks[0], (VOCAB, E), 0.02),
        "w_img": nrm(ks[1], (C, IMG_DIM), 1.0 / np.sqrt(C)),
        "b_img": nrm(ks[2], (1, IMG_DIM), 0.01),
        "w_txt": nrm(ks[3], (E, TXT_DIM), 1.0 / np.sqrt(E)),
        "b_txt": nrm(ks[4], (1, TXT_DIM), 0.01),
        "w1":   nrm(ks[5], (IMG_DIM + TXT_DIM, HID), 1.0 / np.sqrt(IMG_DIM + TXT_DIM)),
        "b1":   nrm(ks[6], (1, HID), 0.01),
        "w2":   nrm(ks[7], (HID, NUM_CLASSES), 1.0 / np.sqrt(HID)),
        "b2":   nrm(ks[8], (1, NUM_CLASSES), 0.01),
    }


def reference_forward(image, input_ids, attention_mask, params):
    """Exact f32 reference with the original (unfused) module structure."""
    bq = image.shape[0]
    img_flat = image.reshape(bq, C, HW).astype(jnp.float32)
    pooled = jnp.mean(img_flat, axis=-1)
    img_feat = pooled @ params["w_img"] + params["b_img"]
    emb0 = jnp.take(params["emb_table"], input_ids, axis=0)[:, 0, :]
    txt_feat = emb0 @ params["w_txt"] + params["b_txt"]
    combined = jnp.concatenate([img_feat, txt_feat], axis=-1)
    h = jnp.maximum(combined @ params["w1"] + params["b1"], 0.0)
    return h @ params["w2"] + params["b2"]


if __name__ == "__main__":
    key = jax.random.PRNGKey(0)
    k_img, k_ids, k_par = jax.random.split(key, 3)

    image = jax.random.normal(k_img, (B, C, H, W), jnp.float32)
    input_ids = jax.random.randint(k_ids, (B, L), 0, VOCAB, jnp.int32)
    attention_mask = jnp.ones((B, L), jnp.int32)
    params = init_params(k_par)
    folded = fold_params(params)

    out = multimodal_classifier(image, input_ids, attention_mask, params, folded)
    out = jax.block_until_ready(out)

    ref = reference_forward(image, input_ids, attention_mask, params)
    assert out.shape == (B, NUM_CLASSES)
    # Kernel matmuls run with bf16 operands and f32 MXU accumulation, and the
    # folded weights are rounded to bf16 once -> relaxed tolerance vs exact f32.
    assert jnp.allclose(out, ref, atol=2e-2, rtol=2e-2), (
        f"mismatch vs JAX reference: max abs diff {jnp.max(jnp.abs(out - ref))}")
    print("KERNEL_OK")
</pallas_src>

<mosaic_0001>
module attributes {stable_mosaic.version = 11 : i64} {
  func.func @multimodal_kernel(%arg0: i32, %arg1: memref<16x1024xbf16, #tpu.memory_space<vmem>>, %arg2: memref<16x128xbf16, #tpu.memory_space<vmem>>, %arg3: memref<1024x512xbf16, #tpu.memory_space<vmem>>, %arg4: memref<128x512xbf16, #tpu.memory_space<vmem>>, %arg5: memref<1x512xf32, #tpu.memory_space<vmem>>, %arg6: memref<512x128xbf16, #tpu.memory_space<vmem>>, %arg7: memref<1x128xf32, #tpu.memory_space<vmem>>, %arg8: memref<16x128xf32, #tpu.memory_space<vmem>>) attributes {dimension_semantics = [#tpu.dimension_semantics<parallel>], iteration_bounds = array<i64: 1>, scalar_prefetch = 0 : i64, scratch_operands = 0 : i64, tpu.core_type = #tpu.core_type<tc>, window_params = [{transform_indices = @transform_0, window_bounds = array<i64: 16, 1024>}, {transform_indices = @transform_1, window_bounds = array<i64: 16, 128>}, {pipeline_mode = #tpu.pipeline_mode<synchronous>, transform_indices = @transform_2, window_bounds = array<i64: 1024, 512>}, {pipeline_mode = #tpu.pipeline_mode<synchronous>, transform_indices = @transform_3, window_bounds = array<i64: 128, 512>}, {pipeline_mode = #tpu.pipeline_mode<synchronous>, transform_indices = @transform_4, window_bounds = array<i64: 1, 512>}, {pipeline_mode = #tpu.pipeline_mode<synchronous>, transform_indices = @transform_5, window_bounds = array<i64: 512, 128>}, {pipeline_mode = #tpu.pipeline_mode<synchronous>, transform_indices = @transform_6, window_bounds = array<i64: 1, 128>}, {transform_indices = @transform_7, window_bounds = array<i64: 16, 128>}]} {
    %c0 = arith.constant 0 : index
    %c0_0 = arith.constant 0 : index
    %0 = vector.load %arg1[%c0, %c0_0] : memref<16x1024xbf16, #tpu.memory_space<vmem>>, vector<16x1024xbf16>
    %c0_1 = arith.constant 0 : index
    %c0_2 = arith.constant 0 : index
    %1 = vector.load %arg3[%c0_1, %c0_2] : memref<1024x512xbf16, #tpu.memory_space<vmem>>, vector<1024x512xbf16>
    %cst = arith.constant dense<0.000000e+00> : vector<16x512xf32>
    %2 = tpu.matmul %0, %1, %cst {dimension_numbers = #tpu.dot_dimension_numbers<[1], [0], [0], [1], [0, 0, 1, 1], [], []>} : vector<16x1024xbf16>, vector<1024x512xbf16>, vector<16x512xf32> -> vector<16x512xf32>
    %c0_3 = arith.constant 0 : index
    %c0_4 = arith.constant 0 : index
    %3 = vector.load %arg2[%c0_3, %c0_4] : memref<16x128xbf16, #tpu.memory_space<vmem>>, vector<16x128xbf16>
    %c0_5 = arith.constant 0 : index
    %c0_6 = arith.constant 0 : index
    %4 = vector.load %arg4[%c0_5, %c0_6] : memref<128x512xbf16, #tpu.memory_space<vmem>>, vector<128x512xbf16>
    %cst_7 = arith.constant dense<0.000000e+00> : vector<16x512xf32>
    %5 = tpu.matmul %3, %4, %cst_7 {dimension_numbers = #tpu.dot_dimension_numbers<[1], [0], [0], [1], [0, 0, 1, 1], [], []>} : vector<16x128xbf16>, vector<128x512xbf16>, vector<16x512xf32> -> vector<16x512xf32>
    %6 = arith.addf %2, %5 : vector<16x512xf32>
    %c0_8 = arith.constant 0 : index
    %c0_9 = arith.constant 0 : index
    %7 = vector.load %arg5[%c0_8, %c0_9] : memref<1x512xf32, #tpu.memory_space<vmem>>, vector<1x512xf32>
    %8 = vector.broadcast %7 : vector<1x512xf32> to vector<16x512xf32>
    %9 = arith.addf %6, %8 : vector<16x512xf32>
    %cst_10 = arith.constant 0.000000e+00 : f32
    %10 = vector.broadcast %cst_10 : f32 to vector<16x512xf32>
    %11 = arith.maximumf %9, %10 : vector<16x512xf32>
    %12 = arith.truncf %11 : vector<16x512xf32> to vector<16x512xbf16>
    %c0_11 = arith.constant 0 : index
    %c0_12 = arith.constant 0 : index
    %13 = vector.load %arg6[%c0_11, %c0_12] : memref<512x128xbf16, #tpu.memory_space<vmem>>, vector<512x128xbf16>
    %cst_13 = arith.constant dense<0.000000e+00> : vector<16x128xf32>
    %14 = tpu.matmul %12, %13, %cst_13 {dimension_numbers = #tpu.dot_dimension_numbers<[1], [0], [0], [1], [0, 0, 1, 1], [], []>} : vector<16x512xbf16>, vector<512x128xbf16>, vector<16x128xf32> -> vector<16x128xf32>
    %c0_14 = arith.constant 0 : index
    %c0_15 = arith.constant 0 : index
    %15 = vector.load %arg7[%c0_14, %c0_15] : memref<1x128xf32, #tpu.memory_space<vmem>>, vector<1x128xf32>
    %16 = vector.broadcast %15 : vector<1x128xf32> to vector<16x128xf32>
    %17 = arith.addf %14, %16 : vector<16x128xf32>
    %c0_16 = arith.constant 0 : index
    %c0_17 = arith.constant 0 : index
    %18 = vector.load %arg8[%c0_16, %c0_17] : memref<16x128xf32, #tpu.memory_space<vmem>>, vector<16x128xf32>
    tpu.vector_store %arg8[%c0_16, %c0_17], %17 {strides = array<i32>} : memref<16x128xf32, #tpu.memory_space<vmem>>, vector<16x128xf32>,
    return
  }
  func.func @transform_0(%arg0: i32) -> (i32, i32) {
    %c0_i32 = arith.constant 0 : i32
    %c0_i32_0 = arith.constant 0 : i32
    return %arg0, %c0_i32 : i32, i32
  }
  func.func @transform_1(%arg0: i32) -> (i32, i32) {
    %c0_i32 = arith.constant 0 : i32
    %c0_i32_0 = arith.constant 0 : i32
    return %arg0, %c0_i32 : i32, i32
  }
  func.func @transform_2(%arg0: i32) -> (i32, i32) {
    %c0_i32 = arith.constant 0 : i32
    %c0_i32_0 = arith.constant 0 : i32
    %c0_i32_1 = arith.constant 0 : i32
    return %c0_i32, %c0_i32_0 : i32, i32
  }
  func.func @transform_3(%arg0: i32) -> (i32, i32) {
    %c0_i32 = arith.constant 0 : i32
    %c0_i32_0 = arith.constant 0 : i32
    %c0_i32_1 = arith.constant 0 : i32
    return %c0_i32, %c0_i32_0 : i32, i32
  }
  func.func @transform_4(%arg0: i32) -> (i32, i32) {
    %c0_i32 = arith.constant 0 : i32
    %c0_i32_0 = arith.constant 0 : i32
    %c0_i32_1 = arith.constant 0 : i32
    return %c0_i32, %c0_i32_0 : i32, i32
  }
  func.func @transform_5(%arg0: i32) -> (i32, i32) {
    %c0_i32 = arith.constant 0 : i32
    %c0_i32_0 = arith.constant 0 : i32
    %c0_i32_1 = arith.constant 0 : i32
    return %c0_i32, %c0_i32_0 : i32, i32
  }
  func.func @transform_6(%arg0: i32) -> (i32, i32) {
    %c0_i32 = arith.constant 0 : i32
    %c0_i32_0 = arith.constant 0 : i32
    %c0_i32_1 = arith.constant 0 : i32
    return %c0_i32, %c0_i32_0 : i32, i32
  }
  func.func @transform_7(%arg0: i32) -> (i32, i32) {
    %c0_i32 = arith.constant 0 : i32
    %c0_i32_0 = arith.constant 0 : i32
    return %arg0, %c0_i32 : i32, i32
  }
}

</mosaic_0001>

<bundles_post_ra>
// kernel: tpu_custom_call.1
= control target key start
LH: loop header
LB: loop body
LE: loop exit
PB: predicated region body
PF: predicated region fallthrough
CT: control target
= control target key end

     0   :  { %12 = vsyncpa [#allocation3], 0  ;;  %s4827_s0 = inlined_call_operand.hbm [shape: bf16[16,1024], index: 0, kind: input, shape index: {}]   ;;  %s4828_s1 = inlined_call_operand.hbm [shape: bf16[16,128], index: 1, kind: input, shape index: {}]   ;;  %s4829_s2 = inlined_call_operand.hbm [shape: bf16[1024,512], index: 2, kind: input, shape index: {}]   ;;  %s4830_s3 = inlined_call_operand.hbm [shape: bf16[128,512], index: 3, kind: input, shape index: {}]   ;;  %s4831_s4 = inlined_call_operand.hbm [shape: f32[1,512], index: 4, kind: input, shape index: {}]   ;;  %s4832_s5 = inlined_call_operand.hbm [shape: bf16[512,128], index: 5, kind: input, shape index: {}]   ;;  %s4833_s6 = inlined_call_operand.vmem [shape: f32[1,128], index: 6, kind: input, shape index: {}]   ;;  %s4834_s7 = inlined_call_operand.hbm [shape: f32[16,128], index: 7, kind: output, shape index: {}]  }
   0x1   :  { %13 = vsyncpa [#allocation6], 0 }
   0x2   :  { %14 = vsyncpa [#allocation9], 0 }
   0x3   :  { %15 = vsyncpa [#allocation12], 0  ;;  %s34_s26 = sshll.u32 %s4828_s1, 4  ;;  %s35_s26 = int_to_ptr.hbm [resolvable:$true] %s34_s26 }
   0x4   :  { %16 = vsyncpa [#allocation4], 0  ;;  %s4616_s27 = smov [#allocation5]   ;;  %s4617_s29 = smov 64  }
   0x5   :  { %s36_s28 = sshll.u32 %s4616_s27, 4  ;;  %s4618_s30 = smov 4   ;;  %s37_s28 = int_to_ptr.vmem [resolvable:$true] %s36_s28 }
   0x6   :  { %42 = dma.hbm_to_vmem [thread:$0]  %s35_s26, 128, %s37_s28, [#allocation6], %s4617_s29, %s4617_s29, %s4618_s30  }
   0x7   :  { %s60_s10 = sshll.u32 %s4830_s3, 4  ;;  %s4619_s11 = smov [#allocation8]   ;;  %s61_s10 = int_to_ptr.hbm [resolvable:$true] %s60_s10 }
   0x8   :  { %s62_s12 = sshll.u32 %s4619_s11, 4  ;;  %s21_s14 = sshll.u32 %s4827_s0, 4  ;;  %s63_s12 = int_to_ptr.vmem [resolvable:$true] %s62_s12  ;;  %s22_s14 = int_to_ptr.hbm [resolvable:$true] %s21_s14 }
   0x9   :  { %s4620_s15 = smov 256   ;;  %s4621_s16 = smov 16  }
   0xa   :  { %68 = dma.hbm_to_vmem [thread:$0]  %s61_s10, 4096, %s63_s12, [#allocation9], %s4620_s15, %s4620_s15, %s4621_s16  }
   0xb   :  { %s4622_s17 = smov [#allocation2]   ;;  %s47_s21 = sshll.u32 %s4829_s2, 4  ;;  %s48_s21 = int_to_ptr.hbm [resolvable:$true] %s47_s21 }
   0xc   :  { %s23_s18 = sshll.u32 %s4622_s17, 4  ;;  %s4623_s3 = smov 512   ;;  %s24_s18 = int_to_ptr.vmem [resolvable:$true] %s23_s18 }
   0xd   :  { %s4624_s22 = smov 32   ;;  %s4625_s23 = smov [#allocation7]  }
   0xe   :  { %29 = dma.hbm_to_vmem [thread:$0]  %s22_s14, 1024, %s24_s18, [#allocation3], %s4623_s3, %s4623_s3, %s4624_s22  }
   0xf   :  { %s49_s24 = sshll.u32 %s4625_s23, 4  ;;  %s74_s26 = sshll.u32 %s4831_s4, 4  ;;  %s50_s24 = int_to_ptr.vmem [resolvable:$true] %s49_s24  ;;  %s75_s26 = int_to_ptr.hbm [resolvable:$true] %s74_s26 }
  0x10   :  { %55 = dma.hbm_to_vmem [thread:$0]  %s48_s21, 32768, %s50_s24, [#allocation6], %s4620_s15, %s4620_s15, %s4621_s16  }
  0x11   :  { %s84_s8 = sshll.u32 %s4832_s5, 4  ;;  %s4626_s9 = smov [#allocation10]   ;;  %s85_s8 = int_to_ptr.hbm [resolvable:$true] %s84_s8 }
  0x12   :  { %s76_s10 = sshll.u32 %s4626_s9, 4  ;;  %s4627_s2 = smov [#allocation11]   ;;  %s77_s10 = int_to_ptr.vmem [resolvable:$true] %s76_s10 }
  0x13   :  { %79 = dma.hbm_to_vmem [thread:$0]  %s75_s26, 64, %s77_s10, [#allocation9]  }
  0x14   :  { %s86_s11 = sshll.u32 %s4627_s2, 4  ;;  %s87_s11 = int_to_ptr.vmem [resolvable:$true] %s86_s11 }
  0x15   :  { %92 = dma.hbm_to_vmem [thread:$0]  %s85_s8, 4096, %s87_s11, [#allocation12], %s4617_s29, %s4617_s29, %s4618_s30  }
  0x16   :  { %4606 = dma.done.wait [#allocation3], 1024  }
  0x17   :  { %4607 = vsyncadd [#allocation3], 4294966272 }
  0x18   :  { %4608 = dma.done.wait [#allocation6], 32896  }
  0x19   :  { %4609 = vsyncadd [#allocation6], 4294934400 }
  0x1a   :  { %4610 = dma.done.wait [#allocation9], 4160  }
  0x1b   :  { %4611 = vsyncadd [#allocation9], 4294963136 }
  0x1c   :  { %4612 = dma.done.wait [#allocation12], 4096  }
  0x1d   :  { %4613 = vsyncadd [#allocation12], 4294963200  ;;  %v2895_v0 = vld [vmem:[#allocation8 + $0xe0] sm:$0xf]  ;;  %v4388_v1 = vld [vmem:[#allocation8 + $0xec] sm:$0xf0] }
  0x1e   :  { %v4386_v2 = vld [vmem:[#allocation8 + $0xe4] sm:$0xf]  ;;  %v2896_v3 = vor.u32 %v4388_v1, %v2895_v0  ;;  %v2897_v4 = vld [vmem:[#allocation8 + $0xf0] sm:$0xf0]  ;;  %v2903_v5 = vld [vmem:[#allocation8 + $0xe8] sm:$0xf] }
  0x1f   :  { %v4389_v6 = vld [vmem:[#allocation8 + $0xf4] sm:$0xf0]  ;;  %v2900_v7 = vor.u32 %v4386_v2, %v2897_v4  ;;  %v4387_v9 = vld [vmem:[#allocation8 + $0xec] sm:$0xf]  ;;  %v2905_v10 = vld [vmem:[#allocation8 + $0xf8] sm:$0xf0] }
  0x20   :  { %v2904_v8 = vor.u32 %v4389_v6, %v2903_v5  ;;  %v2879_v11 = vld [vmem:[#allocation8 + $0xc0] sm:$0xf]  ;;  %583 = vmatpush.bf16.msra.mxu0 %v2896_v3  ;;  %v2908_v12 = vor.u32 %v4387_v9, %v2905_v10  ;;  %v4384_v13 = vld [vmem:[#allocation8 + $0xcc] sm:$0xf0]  ;;  %v4382_v14 = vld [vmem:[#allocation8 + $0xc4] sm:$0xf] }
  0x21   :  { %v2881_v15 = vld [vmem:[#allocation8 + $0xd0] sm:$0xf0]  ;;  %597 = vmatpush.bf16.msra.mxu1 %v2900_v7  ;;  %v2880_v16 = vor.u32 %v4384_v13, %v2879_v11  ;;  %v2887_v18 = vld [vmem:[#allocation8 + $0xc8] sm:$0xf]  ;;  %v4385_v19 = vld [vmem:[#allocation8 + $0xd4] sm:$0xf0] }
  0x22   :  { %611 = vmatpush.bf16.msra.mxu2 %v2904_v8  ;;  %v2884_v17 = vor.u32 %v4382_v14, %v2881_v15  ;;  %v4383_v20 = vld [vmem:[#allocation8 + $0xcc] sm:$0xf]  ;;  %625 = vmatpush.bf16.msra.mxu3 %v2908_v12  ;;  %v2888_v21 = vor.u32 %v4385_v19, %v2887_v18  ;;  %v2889_v22 = vld [vmem:[#allocation8 + $0xd8] sm:$0xf0]  ;;  %v2863_v23 = vld [vmem:[#allocation8 + $0xa0] sm:$0xf] }
  0x23   :  { %v4380_v24 = vld [vmem:[#allocation8 + $0xac] sm:$0xf0]  ;;  %v2892_v25 = vor.u32 %v4383_v20, %v2889_v22  ;;  %v4378_v26 = vld [vmem:[#allocation8 + $0xa4] sm:$0xf]  ;;  %v2865_v27 = vld [vmem:[#allocation8 + $0xb0] sm:$0xf0] }
  0x24   :  { %v2871_v28 = vld [vmem:[#allocation8 + $0xa8] sm:$0xf]  ;;  %584 = vmatpush.bf16.msra.mxu0 %v2880_v16  ;;  %v2864_v29 = vor.u32 %v4380_v24, %v2863_v23  ;;  %v4381_v30 = vld [vmem:[#allocation8 + $0xb4] sm:$0xf0]  ;;  %v4379_v31 = vld [vmem:[#allocation8 + $0xac] sm:$0xf]  ;;  %v2868_v33 = vor.u32 %v4378_v26, %v2865_v27 }
  0x25   :  { %v2873_v32 = vld [vmem:[#allocation8 + $0xb8] sm:$0xf0]  ;;  %598 = vmatpush.bf16.msra.mxu1 %v2884_v17  ;;  %v2872_v34 = vor.u32 %v4381_v30, %v2871_v28  ;;  %v2847_v35 = vld [vmem:[#allocation8 + $0x80] sm:$0xf]  ;;  %v4376_v36 = vld [vmem:[#allocation8 + $0x8c] sm:$0xf0] }
  0x26   :  { %612 = vmatpush.bf16.msra.mxu2 %v2888_v21  ;;  %v4374_v37 = vld [vmem:[#allocation8 + $0x84] sm:$0xf]  ;;  %626 = vmatpush.bf16.msra.mxu3 %v2892_v25  ;;  %v2876_v38 = vor.u32 %v4379_v31, %v2873_v32  ;;  %v2849_v39 = vld [vmem:[#allocation8 + $0x90] sm:$0xf0]  ;;  %v2855_v40 = vld [vmem:[#allocation8 + $0x88] sm:$0xf]  ;;  %v2848_v44 = vor.u32 %v4376_v36, %v2847_v35 }
  0x27   :  { %v4377_v41 = vld [vmem:[#allocation8 + $0x94] sm:$0xf0]  ;;  %v4375_v42 = vld [vmem:[#allocation8 + $0x8c] sm:$0xf]  ;;  %v2857_v43 = vld [vmem:[#allocation8 + $0x98] sm:$0xf0]  ;;  %v2852_v45 = vor.u32 %v4374_v37, %v2849_v39 }
  0x28   :  { %585 = vmatpush.bf16.msra.mxu0 %v2864_v29  ;;  %v2856_v46 = vor.u32 %v4377_v41, %v2855_v40  ;;  %v2831_v47 = vld [vmem:[#allocation8 + $0x60] sm:$0xf]  ;;  %v4372_v48 = vld [vmem:[#allocation8 + $0x6c] sm:$0xf0]  ;;  %v4370_v49 = vld [vmem:[#allocation8 + $0x64] sm:$0xf]  ;;  %v2860_v50 = vor.u32 %v4375_v42, %v2857_v43 }
  0x29   :  { %599 = vmatpush.bf16.msra.mxu1 %v2868_v33  ;;  %v2833_v51 = vld [vmem:[#allocation8 + $0x70] sm:$0xf0]  ;;  %v2839_v52 = vld [vmem:[#allocation8 + $0x68] sm:$0xf]  ;;  %v4373_v53 = vld [vmem:[#allocation8 + $0x74] sm:$0xf0]  ;;  %v2832_v56 = vor.u32 %v4372_v48, %v2831_v47 }
  0x2a   :  { %613 = vmatpush.bf16.msra.mxu2 %v2872_v34  ;;  %627 = vmatpush.bf16.msra.mxu3 %v2876_v38  ;;  %v4371_v54 = vld [vmem:[#allocation8 + $0x6c] sm:$0xf]  ;;  %v2841_v55 = vld [vmem:[#allocation8 + $0x78] sm:$0xf0]  ;;  %v2836_v57 = vor.u32 %v4370_v49, %v2833_v51  ;;  %v2840_v58 = vor.u32 %v4373_v53, %v2839_v52  ;;  %v2815_v59 = vld [vmem:[#allocation8 + $0x40] sm:$0xf] }
  0x2b   :  { %v4368_v60 = vld [vmem:[#allocation8 + $0x4c] sm:$0xf0]  ;;  %v4366_v61 = vld [vmem:[#allocation8 + $0x44] sm:$0xf]  ;;  %v2844_v62 = vor.u32 %v4371_v54, %v2841_v55  ;;  %v2817_v63 = vld [vmem:[#allocation8 + $0x50] sm:$0xf0] }
  0x2c   :  { %586 = vmatpush.bf16.msra.mxu0 %v2848_v44  ;;  %v2823_v0 = vld [vmem:[#allocation8 + $0x48] sm:$0xf]  ;;  %v4369_v1 = vld [vmem:[#allocation8 + $0x54] sm:$0xf0]  ;;  %v4367_v2 = vld [vmem:[#allocation8 + $0x4c] sm:$0xf]  ;;  %v2816_v4 = vor.u32 %v4368_v60, %v2815_v59  ;;  %v2820_v5 = vor.u32 %v4366_v61, %v2817_v63 }
  0x2d   :  { %600 = vmatpush.bf16.msra.mxu1 %v2852_v45  ;;  %v2825_v3 = vld [vmem:[#allocation8 + $0x58] sm:$0xf0]  ;;  %v2824_v6 = vor.u32 %v4369_v1, %v2823_v0  ;;  %v2799_v7 = vld [vmem:[#allocation8 + $0x20] sm:$0xf]  ;;  %v4364_v8 = vld [vmem:[#allocation8 + $0x2c] sm:$0xf0] }
  0x2e   :  { %614 = vmatpush.bf16.msra.mxu2 %v2856_v46  ;;  %628 = vmatpush.bf16.msra.mxu3 %v2860_v50  ;;  %v4362_v9 = vld [vmem:[#allocation8 + $0x24] sm:$0xf]  ;;  %v2828_v10 = vor.u32 %v4367_v2, %v2825_v3  ;;  %v2801_v11 = vld [vmem:[#allocation8 + $0x30] sm:$0xf0]  ;;  %v2807_v12 = vld [vmem:[#allocation8 + $0x28] sm:$0xf]  ;;  %v2800_v16 = vor.u32 %v4364_v8, %v2799_v7 }
  0x2f   :  { %v4365_v13 = vld [vmem:[#allocation8 + $0x34] sm:$0xf0]  ;;  %v4363_v14 = vld [vmem:[#allocation8 + $0x2c] sm:$0xf]  ;;  %v2809_v15 = vld [vmem:[#allocation8 + $0x38] sm:$0xf0]  ;;  %v2804_v19 = vor.u32 %v4362_v9, %v2801_v11 }
  0x30   :  { %587 = vmatpush.bf16.msra.mxu0 %v2832_v56  ;;  %v2783_v17 = vld [vmem:[#allocation8] sm:$0xf]  ;;  %v4360_v18 = vld [vmem:[#allocation8 + $0xc] sm:$0xf0]  ;;  %v2808_v20 = vor.u32 %v4365_v13, %v2807_v12  ;;  %v4358_v21 = vld [vmem:[#allocation8 + $0x4] sm:$0xf]  ;;  %v2812_v24 = vor.u32 %v4363_v14, %v2809_v15 }
  0x31   :  { %601 = vmatpush.bf16.msra.mxu1 %v2836_v57  ;;  %v2785_v22 = vld [vmem:[#allocation8 + $0x10] sm:$0xf0]  ;;  %v2791_v23 = vld [vmem:[#allocation8 + $0x8] sm:$0xf]  ;;  %v4361_v25 = vld [vmem:[#allocation8 + $0x14] sm:$0xf0]  ;;  %v2784_v31 = vor.u32 %v4360_v18, %v2783_v17 }
  0x32   :  { %615 = vmatpush.bf16.msra.mxu2 %v2840_v58  ;;  %629 = vmatpush.bf16.msra.mxu3 %v2844_v62  ;;  %v4359_v26 = vld [vmem:[#allocation8 + $0xc] sm:$0xf]  ;;  %v2793_v27 = vld [vmem:[#allocation8 + $0x18] sm:$0xf0]  ;;  %v3055_v28 = vld [vmem:[#allocation7 + $0xe0] sm:$0xf]  ;;  %v2788_v35 = vor.u32 %v4358_v21, %v2785_v22  ;;  %v2792_v36 = vor.u32 %v4361_v25, %v2791_v23 }
  0x33   :  { %v4131_v29 = vld [vmem:[#allocation7 + $0xec] sm:$0xf0]  ;;  %v3183_v30 = vld [vmem:[#allocation7 + $0x1e0] sm:$0xf]  ;;  %v2796_v39 = vor.u32 %v4359_v26, %v2793_v27  ;;  %v4357_v52 = vld [vmem:[#allocation5] sm:$0xff]  ;;  %s4628_s29 = smov [#allocation13]  }
  0x34   :  { %588 = vmatpush.bf16.msra.mxu0 %v2816_v4  ;;  %v4163_v32 = vld [vmem:[#allocation7 + $0x1ec] sm:$0xf0]  ;;  %v3311_v33 = vld [vmem:[#allocation7 + $0x2e0] sm:$0xf]  ;;  %v3056_v40 = vor.u32 %v4131_v29, %v3055_v28  ;;  %s2759_s30 = sshll.u32 %s4628_s29, 4  ;;  %s2761_s1 = sshll.u32 %s4834_s7, 4  ;;  %s2760_s30 = int_to_ptr.vmem [resolvable:$true] %s2759_s30  ;;  %s2762_s1 = int_to_ptr.hbm [resolvable:$true] %s2761_s1 }
  0x35   :  { %602 = vmatpush.bf16.msra.mxu1 %v2820_v5  ;;  %v4195_v34 = vld [vmem:[#allocation7 + $0x2ec] sm:$0xf0]  ;;  %v3439_v37 = vld [vmem:[#allocation7 + $0x3e0] sm:$0xf]  ;;  %v3184_v41 = vor.u32 %v4163_v32, %v3183_v30  ;;  %s4630_s14 = smov 8  }
  0x36   :  { %616 = vmatpush.bf16.msra.mxu2 %v2824_v6  ;;  %630 = vmatpush.bf16.msra.mxu3 %v2828_v10  ;;  %v4227_v38 = vld [vmem:[#allocation7 + $0x3ec] sm:$0xf0]  ;;  %v3312_v42 = vor.u32 %v4195_v34, %v3311_v33  ;;  %v3039_v43 = vld [vmem:[#allocation7 + $0xc0] sm:$0xf] }
  0x37   :  { %v4127_v44 = vld [vmem:[#allocation7 + $0xcc] sm:$0xf0]  ;;  %v3167_v45 = vld [vmem:[#allocation7 + $0x1c0] sm:$0xf]  ;;  %v3440_v46 = vor.u32 %v4227_v38, %v3439_v37 }
  0x38   :  { %589 = vmatpush.bf16.msra.mxu0 %v2800_v16  ;;  %v4159_v47 = vld [vmem:[#allocation7 + $0x1cc] sm:$0xf0]  ;;  %v3295_v48 = vld [vmem:[#allocation7 + $0x2c0] sm:$0xf]  ;;  %v3040_v53 = vor.u32 %v4127_v44, %v3039_v43 }
  0x39   :  { %603 = vmatpush.bf16.msra.mxu1 %v2804_v19  ;;  %v4191_v49 = vld [vmem:[#allocation7 + $0x2cc] sm:$0xf0]  ;;  %v3423_v50 = vld [vmem:[#allocation7 + $0x3c0] sm:$0xf]  ;;  %v3168_v54 = vor.u32 %v4159_v47, %v3167_v45 }
  0x3a   :  { %617 = vmatpush.bf16.msra.mxu2 %v2808_v20  ;;  %631 = vmatpush.bf16.msra.mxu3 %v2812_v24  ;;  %v4223_v51 = vld [vmem:[#allocation7 + $0x3cc] sm:$0xf0]  ;;  %v3296_v55 = vor.u32 %v4191_v49, %v3295_v48  ;;  %v3023_v56 = vld [vmem:[#allocation7 + $0xa0] sm:$0xf] }
  0x3b   :  { %v4123_v57 = vld [vmem:[#allocation7 + $0xac] sm:$0xf0]  ;;  %v3151_v58 = vld [vmem:[#allocation7 + $0x1a0] sm:$0xf]  ;;  %v3424_v59 = vor.u32 %v4223_v51, %v3423_v50 }
  0x3c   :  { %590 = vmatpush.bf16.msra.mxu0 %v2784_v31  ;;  %v4155_v60 = vld [vmem:[#allocation7 + $0x1ac] sm:$0xf0]  ;;  %v3279_v61 = vld [vmem:[#allocation7 + $0x2a0] sm:$0xf]  ;;  %v3024_v1 = vor.u32 %v4123_v57, %v3023_v56 }
  0x3d   :  { %604 = vmatpush.bf16.msra.mxu1 %v2788_v35  ;;  %v4187_v62 = vld [vmem:[#allocation7 + $0x2ac] sm:$0xf0]  ;;  %v3407_v63 = vld [vmem:[#allocation7 + $0x3a0] sm:$0xf]  ;;  %v3152_v2 = vor.u32 %v4155_v60, %v3151_v58 }
  0x3e   :  { %618 = vmatpush.bf16.msra.mxu2 %v2792_v36  ;;  %632 = vmatpush.bf16.msra.mxu3 %v2796_v39  ;;  %v4219_v0 = vld [vmem:[#allocation7 + $0x3ac] sm:$0xf0]  ;;  %v3280_v3 = vor.u32 %v4187_v62, %v3279_v61  ;;  %v3007_v4 = vld [vmem:[#allocation7 + $0x80] sm:$0xf] }
  0x3f   :  { %591 = vmatmul.bf16.vlgmr.msra.gmra.mxu0 %v4357_v52  ;;  %v4119_v5 = vld [vmem:[#allocation7 + $0x8c] sm:$0xf0]  ;;  %v3135_v6 = vld [vmem:[#allocation7 + $0x180] sm:$0xf]  ;;  %v3408_v7 = vor.u32 %v4219_v0, %v3407_v63 }
  0x40   :  { %1959 = vmatpush.bf16.msrb.mxu0 %v3056_v40  ;;  %605 = vmatmul.bf16.vlgmr.msra.gmra.mxu1 %v4357_v52  ;;  %v4151_v8 = vld [vmem:[#allocation7 + $0x18c] sm:$0xf0]  ;;  %v3263_v9 = vld [vmem:[#allocation7 + $0x280] sm:$0xf]  ;;  %v3008_v13 = vor.u32 %v4119_v5, %v3007_v4 }
  0x41   :  { %1973 = vmatpush.bf16.msrb.mxu1 %v3184_v41  ;;  %619 = vmatmul.bf16.vlgmr.msra.gmra.mxu2 %v4357_v52  ;;  %v4183_v10 = vld [vmem:[#allocation7 + $0x28c] sm:$0xf0]  ;;  %v3391_v11 = vld [vmem:[#allocation7 + $0x380] sm:$0xf]  ;;  %v3136_v14 = vor.u32 %v4151_v8, %v3135_v6  ;;  %v2911_v6 = vld [vmem:[#allocation2] sm:$0xf] }
  0x42   :  { %1987 = vmatpush.bf16.msrb.mxu2 %v3312_v42  ;;  %2001 = vmatpush.bf16.msrb.mxu3 %v3440_v46  ;;  %v4215_v12 = vld [vmem:[#allocation7 + $0x38c] sm:$0xf0]  ;;  %v3264_v15 = vor.u32 %v4183_v10, %v3263_v9  ;;  %v2991_v16 = vld [vmem:[#allocation7 + $0x60] sm:$0xf] }
  0x43   :  { %633 = vmatmul.bf16.vlgmr.msra.gmra.mxu3 %v4357_v52  ;;  %v4115_v17 = vld [vmem:[#allocation7 + $0x6c] sm:$0xf0]  ;;  %v3119_v18 = vld [vmem:[#allocation7 + $0x160] sm:$0xf]  ;;  %v3392_v19 = vor.u32 %v4215_v12, %v3391_v11  ;;  %v4093_v12 = vld [vmem:[#allocation2 + $0x4] sm:$0xf] }
  0x44   :  { %1960 = vmatpush.bf16.msrb.mxu0 %v3040_v53  ;;  %v4147_v20 = vld [vmem:[#allocation7 + $0x16c] sm:$0xf0]  ;;  %v3247_v21 = vld [vmem:[#allocation7 + $0x260] sm:$0xf]  ;;  %v2992_v25 = vor.u32 %v4115_v17, %v2991_v16  ;;  %v4094_v16 = vld [vmem:[#allocation2 + $0xc] sm:$0xf] }
  0x45   :  { %1974 = vmatpush.bf16.msrb.mxu1 %v3168_v54  ;;  %v4179_v22 = vld [vmem:[#allocation7 + $0x26c] sm:$0xf0]  ;;  %v3375_v23 = vld [vmem:[#allocation7 + $0x360] sm:$0xf]  ;;  %v3120_v26 = vor.u32 %v4147_v20, %v3119_v18  ;;  %v2921_v17 = vld [vmem:[#allocation2 + $0x28] sm:$0xf0] }
  0x46   :  { %1988 = vmatpush.bf16.msrb.mxu2 %v3296_v55  ;;  %2002 = vmatpush.bf16.msrb.mxu3 %v3424_v59  ;;  %v4211_v24 = vld [vmem:[#allocation7 + $0x36c] sm:$0xf0]  ;;  %v3248_v27 = vor.u32 %v4179_v22, %v3247_v21  ;;  %v2975_v28 = vld [vmem:[#allocation7 + $0x40] sm:$0xf] }
  0x47   :  { %v4111_v29 = vld [vmem:[#allocation7 + $0x4c] sm:$0xf0]  ;;  %v3103_v30 = vld [vmem:[#allocation7 + $0x140] sm:$0xf]  ;;  %v3376_v31 = vor.u32 %v4211_v24, %v3375_v23 }
  0x48   :  { %1961 = vmatpush.bf16.msrb.mxu0 %v3024_v1  ;;  %v4143_v32 = vld [vmem:[#allocation7 + $0x14c] sm:$0xf0]  ;;  %v3231_v33 = vld [vmem:[#allocation7 + $0x240] sm:$0xf]  ;;  %v2976_v37 = vor.u32 %v4111_v29, %v2975_v28 }
  0x49   :  { %1975 = vmatpush.bf16.msrb.mxu1 %v3152_v2  ;;  %v4175_v34 = vld [vmem:[#allocation7 + $0x24c] sm:$0xf0]  ;;  %v3359_v35 = vld [vmem:[#allocation7 + $0x340] sm:$0xf]  ;;  %v3104_v39 = vor.u32 %v4143_v32, %v3103_v30  ;;  %v4701_v32 = vor.u32 %v4094_v16, %v2921_v17 }
  0x4a   :  { %1989 = vmatpush.bf16.msrb.mxu2 %v3280_v3  ;;  %2003 = vmatpush.bf16.msrb.mxu3 %v3408_v7  ;;  %v4207_v36 = vld [vmem:[#allocation7 + $0x34c] sm:$0xf0]  ;;  %v2959_v38 = vld [vmem:[#allocation7 + $0x20] sm:$0xf]  ;;  %v3232_v40 = vor.u32 %v4175_v34, %v3231_v33  ;;  %v4097_v7 = vld [vmem:[#allocation2 + $0x1c] sm:$0xf0] }
  0x4b   :  { %v4107_v41 = vld [vmem:[#allocation7 + $0x2c] sm:$0xf0]  ;;  %v3087_v42 = vld [vmem:[#allocation7 + $0x120] sm:$0xf]  ;;  %v3360_v44 = vor.u32 %v4207_v36, %v3359_v35  ;;  %v4695_v24 = vor.u32 %v4097_v7, %v2911_v6 }
  0x4c   :  { %1962 = vmatpush.bf16.msrb.mxu0 %v3008_v13  ;;  %v4139_v43 = vld [vmem:[#allocation7 + $0x12c] sm:$0xf0]  ;;  %v3215_v45 = vld [vmem:[#allocation7 + $0x220] sm:$0xf]  ;;  %v2960_v51 = vor.u32 %v4107_v41, %v2959_v38 }
  0x4d   :  { %1976 = vmatpush.bf16.msrb.mxu1 %v3136_v14  ;;  %v4171_v46 = vld [vmem:[#allocation7 + $0x22c] sm:$0xf0]  ;;  %v3343_v47 = vld [vmem:[#allocation7 + $0x320] sm:$0xf]  ;;  %v3088_v56 = vor.u32 %v4139_v43, %v3087_v42 }
  0x4e   :  { %1990 = vmatpush.bf16.msrb.mxu2 %v3264_v15  ;;  %2004 = vmatpush.bf16.msrb.mxu3 %v3392_v19  ;;  %v4203_v48 = vld [vmem:[#allocation7 + $0x32c] sm:$0xf0]  ;;  %v2943_v49 = vld [vmem:[#allocation7] sm:$0xf]  ;;  %v3216_v57 = vor.u32 %v4171_v46, %v3215_v45  ;;  %v2913_v15 = vld [vmem:[#allocation2 + $0x20] sm:$0xf0] }
  0x4f   :  { %v4103_v50 = vld [vmem:[#allocation7 + $0xc] sm:$0xf0]  ;;  %v3071_v52 = vld [vmem:[#allocation7 + $0x100] sm:$0xf]  ;;  %v3344_v61 = vor.u32 %v4203_v48, %v3343_v47  ;;  %v4699_v29 = vor.u32 %v4093_v12, %v2913_v15 }
  0x50   :  { %1963 = vmatpush.bf16.msrb.mxu0 %v2992_v25  ;;  %v4135_v53 = vld [vmem:[#allocation7 + $0x10c] sm:$0xf0]  ;;  %v3199_v54 = vld [vmem:[#allocation7 + $0x200] sm:$0xf]  ;;  %v2944_v4 = vor.u32 %v4103_v50, %v2943_v49 }
  0x51   :  { %1977 = vmatpush.bf16.msrb.mxu1 %v3120_v26  ;;  %v4167_v55 = vld [vmem:[#allocation7 + $0x20c] sm:$0xf0]  ;;  %v3327_v58 = vld [vmem:[#allocation7 + $0x300] sm:$0xf]  ;;  %v3072_v8 = vor.u32 %v4135_v53, %v3071_v52 }
  0x52   :  { %1991 = vmatpush.bf16.msrb.mxu2 %v3248_v27  ;;  %2005 = vmatpush.bf16.msrb.mxu3 %v3376_v31  ;;  %v4199_v59 = vld [vmem:[#allocation7 + $0x30c] sm:$0xf0]  ;;  %v3567_v60 = vld [vmem:[#allocation7 + $0x4e0] sm:$0xf]  ;;  %v3200_v9 = vor.u32 %v4167_v55, %v3199_v54 }
  0x53   :  { %v4259_v62 = vld [vmem:[#allocation7 + $0x4ec] sm:$0xf0]  ;;  %v3695_v63 = vld [vmem:[#allocation7 + $0x5e0] sm:$0xf]  ;;  %v3328_v13 = vor.u32 %v4199_v59, %v3327_v58 }
  0x54   :  { %1964 = vmatpush.bf16.msrb.mxu0 %v2976_v37  ;;  %v4291_v0 = vld [vmem:[#allocation7 + $0x5ec] sm:$0xf0]  ;;  %v3823_v1 = vld [vmem:[#allocation7 + $0x6e0] sm:$0xf]  ;;  %v3568_v14 = vor.u32 %v4259_v62, %v3567_v60 }
  0x55   :  { %1978 = vmatpush.bf16.msrb.mxu1 %v3104_v39  ;;  %v4323_v2 = vld [vmem:[#allocation7 + $0x6ec] sm:$0xf0]  ;;  %v3951_v3 = vld [vmem:[#allocation7 + $0x7e0] sm:$0xf]  ;;  %v3696_v18 = vor.u32 %v4291_v0, %v3695_v63 }
  0x56   :  { %1992 = vmatpush.bf16.msrb.mxu2 %v3232_v40  ;;  %2006 = vmatpush.bf16.msrb.mxu3 %v3360_v44  ;;  %v4355_v5 = vld [vmem:[#allocation7 + $0x7ec] sm:$0xf0]  ;;  %v2919_v10 = vld [vmem:[#allocation2 + $0x8] sm:$0xf]  ;;  %v3824_v19 = vor.u32 %v4323_v2, %v3823_v1 }
  0x57   :  { %v4098_v11 = vld [vmem:[#allocation2 + $0x24] sm:$0xf0]  ;;  %v4255_v21 = vld [vmem:[#allocation7 + $0x4cc] sm:$0xf0]  ;;  %v3952_v23 = vor.u32 %v4355_v5, %v3951_v3 }
  0x58   :  { %1965 = vmatpush.bf16.msrb.mxu0 %v2960_v51  ;;  %v3551_v20 = vld [vmem:[#allocation7 + $0x4c0] sm:$0xf]  ;;  %v4287_v25 = vld [vmem:[#allocation7 + $0x5cc] sm:$0xf0]  ;;  %v4697_v28 = vor.u32 %v4098_v11, %v2919_v10 }
  0x59   :  { %1979 = vmatpush.bf16.msrb.mxu1 %v3088_v56  ;;  %v3679_v22 = vld [vmem:[#allocation7 + $0x5c0] sm:$0xf]  ;;  %v4319_v27 = vld [vmem:[#allocation7 + $0x6cc] sm:$0xf0]  ;;  %v3552_v33 = vor.u32 %v4255_v21, %v3551_v20 }
  0x5a   :  { %1993 = vmatpush.bf16.msrb.mxu2 %v3216_v57  ;;  %2007 = vmatpush.bf16.msrb.mxu3 %v3344_v61  ;;  %v3807_v26 = vld [vmem:[#allocation7 + $0x6c0] sm:$0xf]  ;;  %v4351_v31 = vld [vmem:[#allocation7 + $0x7cc] sm:$0xf0]  ;;  %v3680_v34 = vor.u32 %v4287_v25, %v3679_v22 }
  0x5b   :  { %v3935_v30 = vld [vmem:[#allocation7 + $0x7c0] sm:$0xf]  ;;  %v3808_v35 = vor.u32 %v4319_v27, %v3807_v26  ;;  %v4251_v37 = vld [vmem:[#allocation7 + $0x4ac] sm:$0xf0] }
  0x5c   :  { %1966 = vmatpush.bf16.msrb.mxu0 %v2944_v4  ;;  %v3535_v36 = vld [vmem:[#allocation7 + $0x4a0] sm:$0xf]  ;;  %v3936_v39 = vor.u32 %v4351_v31, %v3935_v30  ;;  %v4283_v40 = vld [vmem:[#allocation7 + $0x5ac] sm:$0xf0] }
  0x5d   :  { %1980 = vmatpush.bf16.msrb.mxu1 %v3072_v8  ;;  %v3663_v38 = vld [vmem:[#allocation7 + $0x5a0] sm:$0xf]  ;;  %v4315_v42 = vld [vmem:[#allocation7 + $0x6ac] sm:$0xf0]  ;;  %v3536_v45 = vor.u32 %v4251_v37, %v3535_v36 }
  0x5e   :  { %1994 = vmatpush.bf16.msrb.mxu2 %v3200_v9  ;;  %2008 = vmatpush.bf16.msrb.mxu3 %v3328_v13  ;;  %v3791_v41 = vld [vmem:[#allocation7 + $0x6a0] sm:$0xf]  ;;  %v4347_v44 = vld [vmem:[#allocation7 + $0x7ac] sm:$0xf0]  ;;  %v3664_v46 = vor.u32 %v4283_v40, %v3663_v38 }
  0x5f   :  { %1967 = vmatmul.bf16.vlgmr.msrb.gmra.mxu0 %v4695_v24  ;;  %v3919_v43 = vld [vmem:[#allocation7 + $0x7a0] sm:$0xf]  ;;  %v3792_v47 = vor.u32 %v4315_v42, %v3791_v41  ;;  %v4247_v49 = vld [vmem:[#allocation7 + $0x48c] sm:$0xf0] }
  0x60   :  { %2015 = vmatpush.bf16.msra.mxu0 %v3568_v14  ;;  %1981 = vmatmul.bf16.vlgmr.msrb.gmra.mxu1 %v4699_v29  ;;  %v3519_v48 = vld [vmem:[#allocation7 + $0x480] sm:$0xf]  ;;  %v3920_v51 = vor.u32 %v4347_v44, %v3919_v43  ;;  %v4279_v52 = vld [vmem:[#allocation7 + $0x58c] sm:$0xf0]  ;;  %v4129_v44 = vld [vmem:[#allocation7 + $0xe4] sm:$0xf] }
  0x61   :  { %2029 = vmatpush.bf16.msra.mxu1 %v3696_v18  ;;  %1995 = vmatmul.bf16.vlgmr.msrb.gmra.mxu2 %v4697_v28  ;;  %v3647_v50 = vld [vmem:[#allocation7 + $0x580] sm:$0xf]  ;;  %v4311_v54 = vld [vmem:[#allocation7 + $0x68c] sm:$0xf0]  ;;  %v3520_v57 = vor.u32 %v4247_v49, %v3519_v48  ;;  %v3185_v48 = vld [vmem:[#allocation7 + $0x1f0] sm:$0xf0] }
  0x62   :  { %2043 = vmatpush.bf16.msra.mxu2 %v3824_v19  ;;  %2057 = vmatpush.bf16.msra.mxu3 %v3952_v23  ;;  %v3775_v53 = vld [vmem:[#allocation7 + $0x680] sm:$0xf]  ;;  %v4343_v56 = vld [vmem:[#allocation7 + $0x78c] sm:$0xf0]  ;;  %v3648_v58 = vor.u32 %v4279_v52, %v3647_v50  ;;  %v4193_v49 = vld [vmem:[#allocation7 + $0x2e4] sm:$0xf] }
  0x63   :  { %2009 = vmatmul.bf16.vlgmr.msrb.gmra.mxu3 %v4701_v32  ;;  %v3903_v55 = vld [vmem:[#allocation7 + $0x780] sm:$0xf]  ;;  %v3776_v59 = vor.u32 %v4311_v54, %v3775_v53  ;;  %v4243_v61 = vld [vmem:[#allocation7 + $0x46c] sm:$0xf0]  ;;  %v3313_v50 = vld [vmem:[#allocation7 + $0x2f0] sm:$0xf0] }
  0x64   :  { %2016 = vmatpush.bf16.msra.mxu0 %v3552_v33  ;;  %v3503_v60 = vld [vmem:[#allocation7 + $0x460] sm:$0xf]  ;;  %v3904_v63 = vor.u32 %v4343_v56, %v3903_v55  ;;  %v4275_v0 = vld [vmem:[#allocation7 + $0x56c] sm:$0xf0]  ;;  %v3441_v53 = vld [vmem:[#allocation7 + $0x3f0] sm:$0xf0] }
  0x65   :  { %2030 = vmatpush.bf16.msra.mxu1 %v3680_v34  ;;  %v3631_v62 = vld [vmem:[#allocation7 + $0x560] sm:$0xf]  ;;  %v4307_v2 = vld [vmem:[#allocation7 + $0x66c] sm:$0xf0]  ;;  %v3504_v5 = vor.u32 %v4243_v61, %v3503_v60  ;;  %v2927_v54 = vld [vmem:[#allocation2 + $0x10] sm:$0xf] }
  0x66   :  { %2044 = vmatpush.bf16.msra.mxu2 %v3808_v35  ;;  %2058 = vmatpush.bf16.msra.mxu3 %v3936_v39  ;;  %v3759_v1 = vld [vmem:[#allocation7 + $0x660] sm:$0xf]  ;;  %v4339_v4 = vld [vmem:[#allocation7 + $0x76c] sm:$0xf0]  ;;  %v3632_v6 = vor.u32 %v4275_v0, %v3631_v62  ;;  %v4099_v55 = vld [vmem:[#allocation2 + $0x2c] sm:$0xf0] }
  0x67   :  { %v3887_v3 = vld [vmem:[#allocation7 + $0x760] sm:$0xf]  ;;  %v3760_v7 = vor.u32 %v4307_v2, %v3759_v1  ;;  %v4239_v9 = vld [vmem:[#allocation7 + $0x44c] sm:$0xf0]  ;;  %v4095_v60 = vld [vmem:[#allocation2 + $0x14] sm:$0xf] }
  0x68   :  { %2017 = vmatpush.bf16.msra.mxu0 %v3536_v45  ;;  %v3487_v8 = vld [vmem:[#allocation7 + $0x440] sm:$0xf]  ;;  %v3888_v11 = vor.u32 %v4339_v4, %v3887_v3  ;;  %v4271_v12 = vld [vmem:[#allocation7 + $0x54c] sm:$0xf0]  ;;  %v4096_v0 = vld [vmem:[#allocation2 + $0x1c] sm:$0xf]  ;;  %v3316_v3 = vor.u32 %v4193_v49, %v3313_v50 }
  0x69   :  { %2031 = vmatpush.bf16.msra.mxu1 %v3664_v46  ;;  %v3615_v10 = vld [vmem:[#allocation7 + $0x540] sm:$0xf]  ;;  %v4303_v14 = vld [vmem:[#allocation7 + $0x64c] sm:$0xf0]  ;;  %v3488_v17 = vor.u32 %v4239_v9, %v3487_v8  ;;  %v3057_v46 = vld [vmem:[#allocation7 + $0xf0] sm:$0xf0]  ;;  %v4707_v8 = vor.u32 %v4099_v55, %v2927_v54 }
  0x6a   :  { %2045 = vmatpush.bf16.msra.mxu2 %v3792_v47  ;;  %2059 = vmatpush.bf16.msra.mxu3 %v3920_v51  ;;  %v3743_v13 = vld [vmem:[#allocation7 + $0x640] sm:$0xf]  ;;  %v4335_v16 = vld [vmem:[#allocation7 + $0x74c] sm:$0xf0]  ;;  %v3616_v19 = vor.u32 %v4271_v12, %v3615_v10  ;;  %v4161_v47 = vld [vmem:[#allocation7 + $0x1e4] sm:$0xf]  ;;  %v3060_v62 = vor.u32 %v4129_v44, %v3057_v46 }
  0x6b   :  { %v3871_v15 = vld [vmem:[#allocation7 + $0x740] sm:$0xf]  ;;  %v3744_v20 = vor.u32 %v4303_v14, %v3743_v13  ;;  %v4235_v21 = vld [vmem:[#allocation7 + $0x42c] sm:$0xf0]  ;;  %v4225_v51 = vld [vmem:[#allocation7 + $0x3e4] sm:$0xf]  ;;  %v3188_v2 = vor.u32 %v4161_v47, %v3185_v48 }
  0x6c   :  { %2018 = vmatpush.bf16.msra.mxu0 %v3520_v57  ;;  %v3471_v18 = vld [vmem:[#allocation7 + $0x420] sm:$0xf]  ;;  %v4267_v23 = vld [vmem:[#allocation7 + $0x52c] sm:$0xf0]  ;;  %v3872_v25 = vor.u32 %v4335_v16, %v3871_v15  ;;  %v2937_v1 = vld [vmem:[#allocation2 + $0x38] sm:$0xf0] }
  0x6d   :  { %2032 = vmatpush.bf16.msra.mxu1 %v3648_v58  ;;  %v3599_v22 = vld [vmem:[#allocation7 + $0x520] sm:$0xf]  ;;  %v4299_v27 = vld [vmem:[#allocation7 + $0x62c] sm:$0xf0]  ;;  %v3472_v35 = vor.u32 %v4235_v21, %v3471_v18  ;;  %v4125_v4 = vld [vmem:[#allocation7 + $0xc4] sm:$0xf]  ;;  %v4713_v16 = vor.u32 %v4096_v0, %v2937_v1 }
  0x6e   :  { %2046 = vmatpush.bf16.msra.mxu2 %v3776_v59  ;;  %2060 = vmatpush.bf16.msra.mxu3 %v3904_v63  ;;  %v3727_v26 = vld [vmem:[#allocation7 + $0x620] sm:$0xf]  ;;  %v4331_v31 = vld [vmem:[#allocation7 + $0x72c] sm:$0xf0]  ;;  %v3600_v40 = vor.u32 %v4267_v23, %v3599_v22  ;;  %v2929_v63 = vld [vmem:[#allocation2 + $0x30] sm:$0xf0] }
  0x6f   :  { %v3855_v30 = vld [vmem:[#allocation7 + $0x720] sm:$0xf]  ;;  %v4231_v34 = vld [vmem:[#allocation7 + $0x40c] sm:$0xf0]  ;;  %v3728_v41 = vor.u32 %v4299_v27, %v3727_v26  ;;  %v3169_v9 = vld [vmem:[#allocation7 + $0x1d0] sm:$0xf0]  ;;  %v4711_v13 = vor.u32 %v4095_v60, %v2929_v63 }
  0x70   :  { %2019 = vmatpush.bf16.msra.mxu0 %v3504_v5  ;;  %v3455_v33 = vld [vmem:[#allocation7 + $0x400] sm:$0xf]  ;;  %v4263_v37 = vld [vmem:[#allocation7 + $0x50c] sm:$0xf0]  ;;  %v3856_v45 = vor.u32 %v4331_v31, %v3855_v30  ;;  %v3041_v5 = vld [vmem:[#allocation7 + $0xd0] sm:$0xf0] }
  0x71   :  { %2033 = vmatpush.bf16.msra.mxu1 %v3632_v6  ;;  %v3583_v36 = vld [vmem:[#allocation7 + $0x500] sm:$0xf]  ;;  %v4295_v39 = vld [vmem:[#allocation7 + $0x60c] sm:$0xf0]  ;;  %v3456_v52 = vor.u32 %v4231_v34, %v3455_v33  ;;  %v4157_v6 = vld [vmem:[#allocation7 + $0x1c4] sm:$0xf] }
  0x72   :  { %2047 = vmatpush.bf16.msra.mxu2 %v3760_v7  ;;  %2061 = vmatpush.bf16.msra.mxu3 %v3888_v11  ;;  %v3711_v38 = vld [vmem:[#allocation7 + $0x600] sm:$0xf]  ;;  %v4327_v43 = vld [vmem:[#allocation7 + $0x70c] sm:$0xf0]  ;;  %v3584_v56 = vor.u32 %v4263_v37, %v3583_v36  ;;  %v3444_v7 = vor.u32 %v4225_v51, %v3441_v53  ;;  %v4189_v10 = vld [vmem:[#allocation7 + $0x2c4] sm:$0xf]  ;;  %v3172_v18 = vor.u32 %v4157_v6, %v3169_v9 }
  0x73   :  { %v3839_v42 = vld [vmem:[#allocation7 + $0x700] sm:$0xf]  ;;  %v3712_v57 = vor.u32 %v4295_v39, %v3711_v38  ;;  %v2935_v58 = vld [vmem:[#allocation2 + $0x18] sm:$0xf]  ;;  %v3297_v11 = vld [vmem:[#allocation7 + $0x2d0] sm:$0xf0] }
  0x74   :  { %2020 = vmatpush.bf16.msra.mxu0 %v3488_v17  ;;  %v4100_v59 = vld [vmem:[#allocation2 + $0x34] sm:$0xf0]  ;;  %v3840_v61 = vor.u32 %v4327_v43, %v3839_v42  ;;  %v4221_v14 = vld [vmem:[#allocation7 + $0x3c4] sm:$0xf]  ;;  %v3425_v15 = vld [vmem:[#allocation7 + $0x3d0] sm:$0xf0]  ;;  %v3044_v17 = vor.u32 %v4125_v4, %v3041_v5 }
  0x75   :  { %2034 = vmatpush.bf16.msra.mxu1 %v3616_v19  ;;  %v4709_v12 = vor.u32 %v4100_v59, %v2935_v58  ;;  %v3300_v19 = vor.u32 %v4189_v10, %v3297_v11  ;;  %v3025_v21 = vld [vmem:[#allocation7 + $0xb0] sm:$0xf0]  ;;  %v4153_v22 = vld [vmem:[#allocation7 + $0x1a4] sm:$0xf]  ;;  %v3428_v23 = vor.u32 %v4221_v14, %v3425_v15 }
  0x76   :  { %2048 = vmatpush.bf16.msra.mxu2 %v3744_v20  ;;  %2062 = vmatpush.bf16.msra.mxu3 %v3872_v25  ;;  %v4121_v20 = vld [vmem:[#allocation7 + $0xa4] sm:$0xf]  ;;  %v3153_v25 = vld [vmem:[#allocation7 + $0x1b0] sm:$0xf0] }
  0x77   :  { %v4185_v26 = vld [vmem:[#allocation7 + $0x2a4] sm:$0xf]  ;;  %v3281_v27 = vld [vmem:[#allocation7 + $0x2b0] sm:$0xf0]  ;;  %v3028_v33 = vor.u32 %v4121_v20, %v3025_v21  ;;  %v3156_v34 = vor.u32 %v4153_v22, %v3153_v25 }
  0x78   :  { %2021 = vmatpush.bf16.msra.mxu0 %v3472_v35  ;;  %v4217_v30 = vld [vmem:[#allocation7 + $0x3a4] sm:$0xf]  ;;  %v3409_v31 = vld [vmem:[#allocation7 + $0x3b0] sm:$0xf0]  ;;  %v3284_v35 = vor.u32 %v4185_v26, %v3281_v27 }
  0x79   :  { %2035 = vmatpush.bf16.msra.mxu1 %v3600_v40  ;;  %v4117_v36 = vld [vmem:[#allocation7 + $0x84] sm:$0xf]  ;;  %v3009_v37 = vld [vmem:[#allocation7 + $0x90] sm:$0xf0]  ;;  %v3412_v39 = vor.u32 %v4217_v30, %v3409_v31 }
  0x7a   :  { %2049 = vmatpush.bf16.msra.mxu2 %v3728_v41  ;;  %2063 = vmatpush.bf16.msra.mxu3 %v3856_v45  ;;  %v4149_v38 = vld [vmem:[#allocation7 + $0x184] sm:$0xf]  ;;  %v3137_v40 = vld [vmem:[#allocation7 + $0x190] sm:$0xf0]  ;;  %v3012_v45 = vor.u32 %v4117_v36, %v3009_v37 }
  0x7b   :  { %v4181_v41 = vld [vmem:[#allocation7 + $0x284] sm:$0xf]  ;;  %v3265_v42 = vld [vmem:[#allocation7 + $0x290] sm:$0xf0]  ;;  %v3140_v46 = vor.u32 %v4149_v38, %v3137_v40 }
  0x7c   :  { %2022 = vmatpush.bf16.msra.mxu0 %v3456_v52  ;;  %v4213_v43 = vld [vmem:[#allocation7 + $0x384] sm:$0xf]  ;;  %v3393_v44 = vld [vmem:[#allocation7 + $0x390] sm:$0xf0]  ;;  %v3268_v47 = vor.u32 %v4181_v41, %v3265_v42 }
  0x7d   :  { %2036 = vmatpush.bf16.msra.mxu1 %v3584_v56  ;;  %v4113_v48 = vld [vmem:[#allocation7 + $0x64] sm:$0xf]  ;;  %v2993_v49 = vld [vmem:[#allocation7 + $0x70] sm:$0xf0]  ;;  %v3396_v51 = vor.u32 %v4213_v43, %v3393_v44 }
  0x7e   :  { %2050 = vmatpush.bf16.msra.mxu2 %v3712_v57  ;;  %2064 = vmatpush.bf16.msra.mxu3 %v3840_v61  ;;  %v4145_v50 = vld [vmem:[#allocation7 + $0x164] sm:$0xf]  ;;  %v3121_v52 = vld [vmem:[#allocation7 + $0x170] sm:$0xf0]  ;;  %v2996_v57 = vor.u32 %v4113_v48, %v2993_v49 }
  0x7f   :  { %2023 = vmatmul.bf16.vlgmr.msra.gmra.mxu0 %v4707_v8  ;;  %v4177_v53 = vld [vmem:[#allocation7 + $0x264] sm:$0xf]  ;;  %v3249_v54 = vld [vmem:[#allocation7 + $0x270] sm:$0xf0]  ;;  %v3124_v58 = vor.u32 %v4145_v50, %v3121_v52 }
  0x80   :  { %2071 = vmatpush.bf16.msrb.mxu0 %v3060_v62  ;;  %2037 = vmatmul.bf16.vlgmr.msra.gmra.mxu1 %v4711_v13  ;;  %v4209_v55 = vld [vmem:[#allocation7 + $0x364] sm:$0xf]  ;;  %v3377_v56 = vld [vmem:[#allocation7 + $0x370] sm:$0xf0]  ;;  %v3252_v59 = vor.u32 %v4177_v53, %v3249_v54 }
  0x81   :  { %2085 = vmatpush.bf16.msrb.mxu1 %v3188_v2  ;;  %2051 = vmatmul.bf16.vlgmr.msra.gmra.mxu2 %v4709_v12  ;;  %v4109_v60 = vld [vmem:[#allocation7 + $0x44] sm:$0xf]  ;;  %v2977_v61 = vld [vmem:[#allocation7 + $0x50] sm:$0xf0]  ;;  %v3380_v63 = vor.u32 %v4209_v55, %v3377_v56 }
  0x82   :  { %2099 = vmatpush.bf16.msrb.mxu2 %v3316_v3  ;;  %2113 = vmatpush.bf16.msrb.mxu3 %v3444_v7  ;;  %v4141_v62 = vld [vmem:[#allocation7 + $0x144] sm:$0xf]  ;;  %v3105_v0 = vld [vmem:[#allocation7 + $0x150] sm:$0xf0]  ;;  %v2980_v5 = vor.u32 %v4109_v60, %v2977_v61 }
  0x83   :  { %2065 = vmatmul.bf16.vlgmr.msra.gmra.mxu3 %v4713_v16  ;;  %v4173_v1 = vld [vmem:[#allocation7 + $0x244] sm:$0xf]  ;;  %v3233_v2 = vld [vmem:[#allocation7 + $0x250] sm:$0xf0]  ;;  %v3108_v6 = vor.u32 %v4141_v62, %v3105_v0 }
  0x84   :  { %2072 = vmatpush.bf16.msrb.mxu0 %v3044_v17  ;;  %v4205_v3 = vld [vmem:[#allocation7 + $0x344] sm:$0xf]  ;;  %v3361_v4 = vld [vmem:[#allocation7 + $0x350] sm:$0xf0]  ;;  %v3236_v7 = vor.u32 %v4173_v1, %v3233_v2 }
  0x85   :  { %2086 = vmatpush.bf16.msrb.mxu1 %v3172_v18  ;;  %v4105_v9 = vld [vmem:[#allocation7 + $0x24] sm:$0xf]  ;;  %v2961_v10 = vld [vmem:[#allocation7 + $0x30] sm:$0xf0]  ;;  %v3364_v14 = vor.u32 %v4205_v3, %v3361_v4 }
  0x86   :  { %2100 = vmatpush.bf16.msrb.mxu2 %v3300_v19  ;;  %2114 = vmatpush.bf16.msrb.mxu3 %v3428_v23  ;;  %v4137_v11 = vld [vmem:[#allocation7 + $0x124] sm:$0xf]  ;;  %v3089_v15 = vld [vmem:[#allocation7 + $0x130] sm:$0xf0]  ;;  %v2964_v21 = vor.u32 %v4105_v9, %v2961_v10 }
  0x87   :  { %v4169_v17 = vld [vmem:[#allocation7 + $0x224] sm:$0xf]  ;;  %v3217_v18 = vld [vmem:[#allocation7 + $0x230] sm:$0xf0]  ;;  %v3092_v25 = vor.u32 %v4137_v11, %v3089_v15 }
  0x88   :  { %2073 = vmatpush.bf16.msrb.mxu0 %v3028_v33  ;;  %v4201_v19 = vld [vmem:[#allocation7 + $0x324] sm:$0xf]  ;;  %v3345_v20 = vld [vmem:[#allocation7 + $0x330] sm:$0xf0]  ;;  %v3220_v26 = vor.u32 %v4169_v17, %v3217_v18 }
  0x89   :  { %2087 = vmatpush.bf16.msrb.mxu1 %v3156_v34  ;;  %v4101_v22 = vld [vmem:[#allocation7 + $0x4] sm:$0xf]  ;;  %v2945_v23 = vld [vmem:[#allocation7 + $0x10] sm:$0xf0]  ;;  %v3348_v33 = vor.u32 %v4201_v19, %v3345_v20 }
  0x8a   :  { %2101 = vmatpush.bf16.msrb.mxu2 %v3284_v35  ;;  %2115 = vmatpush.bf16.msrb.mxu3 %v3412_v39  ;;  %v4133_v27 = vld [vmem:[#allocation7 + $0x104] sm:$0xf]  ;;  %v3073_v30 = vld [vmem:[#allocation7 + $0x110] sm:$0xf0]  ;;  %v2948_v40 = vor.u32 %v4101_v22, %v2945_v23 }
  0x8b   :  { %v4165_v31 = vld [vmem:[#allocation7 + $0x204] sm:$0xf]  ;;  %v3201_v34 = vld [vmem:[#allocation7 + $0x210] sm:$0xf0]  ;;  %v3076_v44 = vor.u32 %v4133_v27, %v3073_v30 }
  0x8c   :  { %2074 = vmatpush.bf16.msrb.mxu0 %v3012_v45  ;;  %v4197_v35 = vld [vmem:[#allocation7 + $0x304] sm:$0xf]  ;;  %v3329_v36 = vld [vmem:[#allocation7 + $0x310] sm:$0xf0]  ;;  %v3204_v45 = vor.u32 %v4165_v31, %v3201_v34 }
  0x8d   :  { %2088 = vmatpush.bf16.msrb.mxu1 %v3140_v46  ;;  %v4257_v37 = vld [vmem:[#allocation7 + $0x4e4] sm:$0xf]  ;;  %v3569_v38 = vld [vmem:[#allocation7 + $0x4f0] sm:$0xf0]  ;;  %v3332_v48 = vor.u32 %v4197_v35, %v3329_v36 }
  0x8e   :  { %2102 = vmatpush.bf16.msrb.mxu2 %v3268_v47  ;;  %2116 = vmatpush.bf16.msrb.mxu3 %v3396_v51  ;;  %v4289_v39 = vld [vmem:[#allocation7 + $0x5e4] sm:$0xf]  ;;  %v3697_v41 = vld [vmem:[#allocation7 + $0x5f0] sm:$0xf0]  ;;  %v3572_v49 = vor.u32 %v4257_v37, %v3569_v38 }
  0x8f   :  { %v4321_v42 = vld [vmem:[#allocation7 + $0x6e4] sm:$0xf]  ;;  %v3825_v43 = vld [vmem:[#allocation7 + $0x6f0] sm:$0xf0]  ;;  %v3700_v50 = vor.u32 %v4289_v39, %v3697_v41 }
  0x90   :  { %2075 = vmatpush.bf16.msrb.mxu0 %v2996_v57  ;;  %v4353_v46 = vld [vmem:[#allocation7 + $0x7e4] sm:$0xf]  ;;  %v3953_v47 = vld [vmem:[#allocation7 + $0x7f0] sm:$0xf0]  ;;  %v3828_v51 = vor.u32 %v4321_v42, %v3825_v43 }
  0x91   :  { %2089 = vmatpush.bf16.msrb.mxu1 %v3124_v58  ;;  %v4253_v52 = vld [vmem:[#allocation7 + $0x4c4] sm:$0xf]  ;;  %v3553_v53 = vld [vmem:[#allocation7 + $0x4d0] sm:$0xf0]  ;;  %v3956_v55 = vor.u32 %v4353_v46, %v3953_v47 }
  0x92   :  { %2103 = vmatpush.bf16.msrb.mxu2 %v3252_v59  ;;  %2117 = vmatpush.bf16.msrb.mxu3 %v3380_v63  ;;  %v4285_v54 = vld [vmem:[#allocation7 + $0x5c4] sm:$0xf]  ;;  %v3681_v56 = vld [vmem:[#allocation7 + $0x5d0] sm:$0xf0]  ;;  %v3556_v61 = vor.u32 %v4253_v52, %v3553_v53 }
  0x93   :  { %v4317_v57 = vld [vmem:[#allocation7 + $0x6c4] sm:$0xf]  ;;  %v3809_v58 = vld [vmem:[#allocation7 + $0x6d0] sm:$0xf0]  ;;  %v3684_v62 = vor.u32 %v4285_v54, %v3681_v56 }
  0x94   :  { %2076 = vmatpush.bf16.msrb.mxu0 %v2980_v5  ;;  %v4349_v59 = vld [vmem:[#allocation7 + $0x7c4] sm:$0xf]  ;;  %v3937_v60 = vld [vmem:[#allocation7 + $0x7d0] sm:$0xf0]  ;;  %v3812_v63 = vor.u32 %v4317_v57, %v3809_v58 }
  0x95   :  { %2090 = vmatpush.bf16.msrb.mxu1 %v3108_v6  ;;  %v4249_v0 = vld [vmem:[#allocation7 + $0x4a4] sm:$0xf]  ;;  %v3537_v1 = vld [vmem:[#allocation7 + $0x4b0] sm:$0xf0]  ;;  %v3940_v3 = vor.u32 %v4349_v59, %v3937_v60 }
  0x96   :  { %2104 = vmatpush.bf16.msrb.mxu2 %v3236_v7  ;;  %2118 = vmatpush.bf16.msrb.mxu3 %v3364_v14  ;;  %v4281_v2 = vld [vmem:[#allocation7 + $0x5a4] sm:$0xf]  ;;  %v3665_v4 = vld [vmem:[#allocation7 + $0x5b0] sm:$0xf0]  ;;  %v3540_v10 = vor.u32 %v4249_v0, %v3537_v1 }
  0x97   :  { %v4313_v5 = vld [vmem:[#allocation7 + $0x6a4] sm:$0xf]  ;;  %v3793_v6 = vld [vmem:[#allocation7 + $0x6b0] sm:$0xf0]  ;;  %v3668_v11 = vor.u32 %v4281_v2, %v3665_v4 }
  0x98   :  { %2077 = vmatpush.bf16.msrb.mxu0 %v2964_v21  ;;  %v4345_v7 = vld [vmem:[#allocation7 + $0x7a4] sm:$0xf]  ;;  %v3921_v9 = vld [vmem:[#allocation7 + $0x7b0] sm:$0xf0]  ;;  %v3796_v14 = vor.u32 %v4313_v5, %v3793_v6 }
  0x99   :  { %2091 = vmatpush.bf16.msrb.mxu1 %v3092_v25  ;;  %v4245_v15 = vld [vmem:[#allocation7 + $0x484] sm:$0xf]  ;;  %v3521_v17 = vld [vmem:[#allocation7 + $0x490] sm:$0xf0]  ;;  %v3924_v19 = vor.u32 %v4345_v7, %v3921_v9 }
  0x9a   :  { %2105 = vmatpush.bf16.msrb.mxu2 %v3220_v26  ;;  %2119 = vmatpush.bf16.msrb.mxu3 %v3348_v33  ;;  %v4277_v18 = vld [vmem:[#allocation7 + $0x584] sm:$0xf]  ;;  %v3649_v20 = vld [vmem:[#allocation7 + $0x590] sm:$0xf0]  ;;  %v3524_v26 = vor.u32 %v4245_v15, %v3521_v17  ;;  %v3063_v17 = vld [vmem:[#allocation7 + $0xe8] sm:$0xf] }
  0x9b   :  { %v4309_v21 = vld [vmem:[#allocation7 + $0x684] sm:$0xf]  ;;  %v3777_v22 = vld [vmem:[#allocation7 + $0x690] sm:$0xf0]  ;;  %v3652_v27 = vor.u32 %v4277_v18, %v3649_v20  ;;  %v4132_v18 = vld [vmem:[#allocation7 + $0xf4] sm:$0xf0] }
  0x9c   :  { %2078 = vmatpush.bf16.msrb.mxu0 %v2948_v40  ;;  %v4341_v23 = vld [vmem:[#allocation7 + $0x784] sm:$0xf]  ;;  %v3905_v25 = vld [vmem:[#allocation7 + $0x790] sm:$0xf0]  ;;  %v3780_v30 = vor.u32 %v4309_v21, %v3777_v22  ;;  %v4164_v21 = vld [vmem:[#allocation7 + $0x1f4] sm:$0xf0] }
  0x9d   :  { %2092 = vmatpush.bf16.msrb.mxu1 %v3076_v44  ;;  %v4241_v31 = vld [vmem:[#allocation7 + $0x464] sm:$0xf]  ;;  %v3505_v33 = vld [vmem:[#allocation7 + $0x470] sm:$0xf0]  ;;  %v3908_v35 = vor.u32 %v4341_v23, %v3905_v25  ;;  %v3319_v22 = vld [vmem:[#allocation7 + $0x2e8] sm:$0xf] }
  0x9e   :  { %2106 = vmatpush.bf16.msrb.mxu2 %v3204_v45  ;;  %2120 = vmatpush.bf16.msrb.mxu3 %v3332_v48  ;;  %v4273_v34 = vld [vmem:[#allocation7 + $0x564] sm:$0xf]  ;;  %v3633_v36 = vld [vmem:[#allocation7 + $0x570] sm:$0xf0]  ;;  %v3508_v41 = vor.u32 %v4241_v31, %v3505_v33  ;;  %v4196_v23 = vld [vmem:[#allocation7 + $0x2f4] sm:$0xf0]  ;;  %v3064_v33 = vor.u32 %v4132_v18, %v3063_v17 }
  0x9f   :  { %2079 = vmatmul.bf16.vlgmr.msrb.gmra.mxu0 %v4695_v24  ;;  %v4305_v37 = vld [vmem:[#allocation7 + $0x664] sm:$0xf]  ;;  %v3761_v38 = vld [vmem:[#allocation7 + $0x670] sm:$0xf0]  ;;  %v3636_v42 = vor.u32 %v4273_v34, %v3633_v36  ;;  %v3047_v36 = vld [vmem:[#allocation7 + $0xc8] sm:$0xf] }
  0xa0   :  { %2127 = vmatpush.bf16.msra.mxu0 %v3572_v49  ;;  %2093 = vmatmul.bf16.vlgmr.msrb.gmra.mxu1 %v4699_v29  ;;  %v4337_v39 = vld [vmem:[#allocation7 + $0x764] sm:$0xf]  ;;  %v3889_v40 = vld [vmem:[#allocation7 + $0x770] sm:$0xf0]  ;;  %v3764_v43 = vor.u32 %v4305_v37, %v3761_v38  ;;  %v4128_v37 = vld [vmem:[#allocation7 + $0xd4] sm:$0xf0] }
  0xa1   :  { %2141 = vmatpush.bf16.msra.mxu1 %v3700_v50  ;;  %2107 = vmatmul.bf16.vlgmr.msrb.gmra.mxu2 %v4697_v28  ;;  %v4237_v44 = vld [vmem:[#allocation7 + $0x444] sm:$0xf]  ;;  %v3489_v45 = vld [vmem:[#allocation7 + $0x450] sm:$0xf0]  ;;  %v3892_v47 = vor.u32 %v4337_v39, %v3889_v40  ;;  %v3175_v38 = vld [vmem:[#allocation7 + $0x1c8] sm:$0xf] }
  0xa2   :  { %2155 = vmatpush.bf16.msra.mxu2 %v3828_v51  ;;  %2169 = vmatpush.bf16.msra.mxu3 %v3956_v55  ;;  %v4269_v46 = vld [vmem:[#allocation7 + $0x544] sm:$0xf]  ;;  %v3617_v48 = vld [vmem:[#allocation7 + $0x550] sm:$0xf0]  ;;  %v3492_v53 = vor.u32 %v4237_v44, %v3489_v45  ;;  %v4160_v40 = vld [vmem:[#allocation7 + $0x1d4] sm:$0xf0]  ;;  %v3048_v45 = vor.u32 %v4128_v37, %v3047_v36 }
  0xa3   :  { %2121 = vmatmul.bf16.vlgmr.msrb.gmra.mxu3 %v4701_v32  ;;  %v4301_v49 = vld [vmem:[#allocation7 + $0x644] sm:$0xf]  ;;  %v3745_v50 = vld [vmem:[#allocation7 + $0x650] sm:$0xf0]  ;;  %v3620_v54 = vor.u32 %v4269_v46, %v3617_v48  ;;  %v4224_v44 = vld [vmem:[#allocation7 + $0x3d4] sm:$0xf0]  ;;  %v3176_v46 = vor.u32 %v4160_v40, %v3175_v38 }
  0xa4   :  { %2128 = vmatpush.bf16.msra.mxu0 %v3556_v61  ;;  %v4333_v51 = vld [vmem:[#allocation7 + $0x744] sm:$0xf]  ;;  %v3873_v52 = vld [vmem:[#allocation7 + $0x750] sm:$0xf0]  ;;  %v3748_v55 = vor.u32 %v4301_v49, %v3745_v50  ;;  %v3031_v48 = vld [vmem:[#allocation7 + $0xa8] sm:$0xf] }
  0xa5   :  { %2142 = vmatpush.bf16.msra.mxu1 %v3684_v62  ;;  %v4233_v56 = vld [vmem:[#allocation7 + $0x424] sm:$0xf]  ;;  %v3473_v57 = vld [vmem:[#allocation7 + $0x430] sm:$0xf0]  ;;  %v3876_v59 = vor.u32 %v4333_v51, %v3873_v52  ;;  %v4124_v49 = vld [vmem:[#allocation7 + $0xb4] sm:$0xf0] }
  0xa6   :  { %2156 = vmatpush.bf16.msra.mxu2 %v3812_v63  ;;  %2170 = vmatpush.bf16.msra.mxu3 %v3940_v3  ;;  %v4265_v58 = vld [vmem:[#allocation7 + $0x524] sm:$0xf]  ;;  %v3601_v60 = vld [vmem:[#allocation7 + $0x530] sm:$0xf0]  ;;  %v3476_v1 = vor.u32 %v4233_v56, %v3473_v57  ;;  %v3159_v50 = vld [vmem:[#allocation7 + $0x1a8] sm:$0xf]  ;;  %v3032_v57 = vor.u32 %v4124_v49, %v3031_v48 }
  0xa7   :  { %v4297_v61 = vld [vmem:[#allocation7 + $0x624] sm:$0xf]  ;;  %v3729_v62 = vld [vmem:[#allocation7 + $0x630] sm:$0xf0]  ;;  %v3604_v4 = vor.u32 %v4265_v58, %v3601_v60  ;;  %v4156_v52 = vld [vmem:[#allocation7 + $0x1b4] sm:$0xf0] }
  0xa8   :  { %2129 = vmatpush.bf16.msra.mxu0 %v3540_v10  ;;  %v4329_v63 = vld [vmem:[#allocation7 + $0x724] sm:$0xf]  ;;  %v3857_v0 = vld [vmem:[#allocation7 + $0x730] sm:$0xf0]  ;;  %v3732_v5 = vor.u32 %v4297_v61, %v3729_v62  ;;  %v4220_v56 = vld [vmem:[#allocation7 + $0x3b4] sm:$0xf0]  ;;  %v3160_v58 = vor.u32 %v4156_v52, %v3159_v50 }
  0xa9   :  { %2143 = vmatpush.bf16.msra.mxu1 %v3668_v11  ;;  %v4229_v2 = vld [vmem:[#allocation7 + $0x404] sm:$0xf]  ;;  %v3457_v3 = vld [vmem:[#allocation7 + $0x410] sm:$0xf0]  ;;  %v3860_v10 = vor.u32 %v4329_v63, %v3857_v0  ;;  %v3015_v60 = vld [vmem:[#allocation7 + $0x88] sm:$0xf] }
  0xaa   :  { %2157 = vmatpush.bf16.msra.mxu2 %v3796_v14  ;;  %2171 = vmatpush.bf16.msra.mxu3 %v3924_v19  ;;  %v4261_v6 = vld [vmem:[#allocation7 + $0x504] sm:$0xf]  ;;  %v3585_v7 = vld [vmem:[#allocation7 + $0x510] sm:$0xf0]  ;;  %v3191_v19 = vld [vmem:[#allocation7 + $0x1e8] sm:$0xf]  ;;  %v3460_v20 = vor.u32 %v4229_v2, %v3457_v3 }
  0xab   :  { %v4293_v9 = vld [vmem:[#allocation7 + $0x604] sm:$0xf]  ;;  %v3713_v11 = vld [vmem:[#allocation7 + $0x610] sm:$0xf0]  ;;  %v3588_v25 = vor.u32 %v4261_v6, %v3585_v7  ;;  %v3192_v34 = vor.u32 %v4164_v21, %v3191_v19  ;;  %v4120_v61 = vld [vmem:[#allocation7 + $0x94] sm:$0xf0] }
  0xac   :  { %2130 = vmatpush.bf16.msra.mxu0 %v3524_v26  ;;  %v4325_v14 = vld [vmem:[#allocation7 + $0x704] sm:$0xf]  ;;  %v3841_v15 = vld [vmem:[#allocation7 + $0x710] sm:$0xf0]  ;;  %v3716_v26 = vor.u32 %v4293_v9, %v3713_v11  ;;  %v3143_v62 = vld [vmem:[#allocation7 + $0x188] sm:$0xf] }
  0xad   :  { %2144 = vmatpush.bf16.msra.mxu1 %v3652_v27  ;;  %v3447_v27 = vld [vmem:[#allocation7 + $0x3e8] sm:$0xf]  ;;  %v3844_v31 = vor.u32 %v4325_v14, %v3841_v15  ;;  %v4152_v0 = vld [vmem:[#allocation7 + $0x194] sm:$0xf0] }
  0xae   :  { %2158 = vmatpush.bf16.msra.mxu2 %v3780_v30  ;;  %2172 = vmatpush.bf16.msra.mxu3 %v3908_v35  ;;  %v4228_v30 = vld [vmem:[#allocation7 + $0x3f4] sm:$0xf0]  ;;  %v3320_v35 = vor.u32 %v4196_v23, %v3319_v22  ;;  %v3399_v3 = vld [vmem:[#allocation7 + $0x388] sm:$0xf]  ;;  %v3144_v6 = vor.u32 %v4152_v0, %v3143_v62 }
  0xaf   :  { %v3448_v39 = vor.u32 %v4228_v30, %v3447_v27  ;;  %v4184_v2 = vld [vmem:[#allocation7 + $0x294] sm:$0xf0]  ;;  %v2999_v9 = vld [vmem:[#allocation7 + $0x68] sm:$0xf] }
  0xb0   :  { %2131 = vmatpush.bf16.msra.mxu0 %v3508_v41  ;;  %v3303_v41 = vld [vmem:[#allocation7 + $0x2c8] sm:$0xf]  ;;  %v4148_v15 = vld [vmem:[#allocation7 + $0x174] sm:$0xf0] }
  0xb1   :  { %2145 = vmatpush.bf16.msra.mxu1 %v3636_v42  ;;  %v4192_v42 = vld [vmem:[#allocation7 + $0x2d4] sm:$0xf0]  ;;  %v3127_v11 = vld [vmem:[#allocation7 + $0x168] sm:$0xf] }
  0xb2   :  { %2159 = vmatpush.bf16.msra.mxu2 %v3764_v43  ;;  %2173 = vmatpush.bf16.msra.mxu3 %v3892_v47  ;;  %v3431_v43 = vld [vmem:[#allocation7 + $0x3c8] sm:$0xf]  ;;  %v3304_v47 = vor.u32 %v4192_v42, %v3303_v41  ;;  %v4180_v18 = vld [vmem:[#allocation7 + $0x274] sm:$0xf0]  ;;  %v3128_v22 = vor.u32 %v4148_v15, %v3127_v11 }
  0xb3   :  { %v3432_v51 = vor.u32 %v4224_v44, %v3431_v43  ;;  %v3255_v17 = vld [vmem:[#allocation7 + $0x268] sm:$0xf]  ;;  %v4208_v36 = vld [vmem:[#allocation7 + $0x354] sm:$0xf0] }
  0xb4   :  { %2132 = vmatpush.bf16.msra.mxu0 %v3492_v53  ;;  %v3287_v53 = vld [vmem:[#allocation7 + $0x2a8] sm:$0xf]  ;;  %v3256_v23 = vor.u32 %v4180_v18, %v3255_v17  ;;  %v4108_v41 = vld [vmem:[#allocation7 + $0x34] sm:$0xf0] }
  0xb5   :  { %2146 = vmatpush.bf16.msra.mxu1 %v3620_v54  ;;  %v4188_v54 = vld [vmem:[#allocation7 + $0x2b4] sm:$0xf0]  ;;  %v3383_v19 = vld [vmem:[#allocation7 + $0x368] sm:$0xf] }
  0xb6   :  { %2160 = vmatpush.bf16.msra.mxu2 %v3748_v55  ;;  %2174 = vmatpush.bf16.msra.mxu3 %v3876_v59  ;;  %v3415_v55 = vld [vmem:[#allocation7 + $0x3a8] sm:$0xf]  ;;  %v3288_v59 = vor.u32 %v4188_v54, %v3287_v53  ;;  %v4140_v44 = vld [vmem:[#allocation7 + $0x134] sm:$0xf0] }
  0xb7   :  { %v3416_v63 = vor.u32 %v4220_v56, %v3415_v55  ;;  %v3111_v27 = vld [vmem:[#allocation7 + $0x148] sm:$0xf]  ;;  %v4204_v48 = vld [vmem:[#allocation7 + $0x334] sm:$0xf0] }
  0xb8   :  { %2133 = vmatpush.bf16.msra.mxu0 %v3476_v1  ;;  %v3271_v1 = vld [vmem:[#allocation7 + $0x288] sm:$0xf]  ;;  %v4136_v55 = vld [vmem:[#allocation7 + $0x114] sm:$0xf0] }
  0xb9   :  { %2147 = vmatpush.bf16.msra.mxu1 %v3604_v4  ;;  %v4216_v4 = vld [vmem:[#allocation7 + $0x394] sm:$0xf0]  ;;  %v3272_v7 = vor.u32 %v4184_v2, %v3271_v1  ;;  %v2967_v40 = vld [vmem:[#allocation7 + $0x28] sm:$0xf] }
  0xba   :  { %2161 = vmatpush.bf16.msra.mxu2 %v3732_v5  ;;  %2175 = vmatpush.bf16.msra.mxu3 %v3860_v10  ;;  %v3016_v5 = vor.u32 %v4120_v61, %v3015_v60  ;;  %v4116_v10 = vld [vmem:[#allocation7 + $0x74] sm:$0xf0]  ;;  %v3400_v14 = vor.u32 %v4216_v4, %v3399_v3  ;;  %v3095_v42 = vld [vmem:[#allocation7 + $0x128] sm:$0xf]  ;;  %v2968_v49 = vor.u32 %v4108_v41, %v2967_v40 }
  0xbb   :  { %v3000_v21 = vor.u32 %v4116_v10, %v2999_v9  ;;  %v2951_v50 = vld [vmem:[#allocation7 + $0x8] sm:$0xf]  ;;  %v3096_v52 = vor.u32 %v4140_v44, %v3095_v42  ;;  %v4200_v60 = vld [vmem:[#allocation7 + $0x314] sm:$0xf0] }
  0xbc   :  { %2134 = vmatpush.bf16.msra.mxu0 %v3460_v20  ;;  %v4212_v20 = vld [vmem:[#allocation7 + $0x374] sm:$0xf0]  ;;  %v3079_v54 = vld [vmem:[#allocation7 + $0x108] sm:$0xf] }
  0xbd   :  { %2148 = vmatpush.bf16.msra.mxu1 %v3588_v25  ;;  %v2983_v25 = vld [vmem:[#allocation7 + $0x48] sm:$0xf]  ;;  %v3384_v30 = vor.u32 %v4212_v20, %v3383_v19  ;;  %v4260_v62 = vld [vmem:[#allocation7 + $0x4f4] sm:$0xf0]  ;;  %v3080_v4 = vor.u32 %v4136_v55, %v3079_v54 }
  0xbe   :  { %2162 = vmatpush.bf16.msra.mxu2 %v3716_v26  ;;  %2176 = vmatpush.bf16.msra.mxu3 %v3844_v31  ;;  %v4112_v26 = vld [vmem:[#allocation7 + $0x54] sm:$0xf0]  ;;  %v3207_v56 = vld [vmem:[#allocation7 + $0x208] sm:$0xf] }
  0xbf   :  { %2135 = vmatmul.bf16.vlgmr.msra.gmra.mxu0 %v4707_v8  ;;  %v4144_v31 = vld [vmem:[#allocation7 + $0x154] sm:$0xf0]  ;;  %v2984_v37 = vor.u32 %v4112_v26, %v2983_v25  ;;  %v3575_v61 = vld [vmem:[#allocation7 + $0x4e8] sm:$0xf] }
  0xc0   :  { %2183 = vmatpush.bf16.msrb.mxu0 %v3064_v33  ;;  %2149 = vmatmul.bf16.vlgmr.msra.gmra.mxu1 %v4711_v13  ;;  %v3239_v33 = vld [vmem:[#allocation7 + $0x248] sm:$0xf]  ;;  %v3112_v38 = vor.u32 %v4144_v31, %v3111_v27  ;;  %v4292_v1 = vld [vmem:[#allocation7 + $0x5f4] sm:$0xf0]  ;;  %v3576_v10 = vor.u32 %v4260_v62, %v3575_v61 }
  0xc1   :  { %2197 = vmatpush.bf16.msrb.mxu1 %v3192_v34  ;;  %2163 = vmatmul.bf16.vlgmr.msra.gmra.mxu2 %v4709_v12  ;;  %v4176_v34 = vld [vmem:[#allocation7 + $0x254] sm:$0xf0]  ;;  %v3831_v2 = vld [vmem:[#allocation7 + $0x6e8] sm:$0xf] }
  0xc2   :  { %2211 = vmatpush.bf16.msrb.mxu2 %v3320_v35  ;;  %2225 = vmatpush.bf16.msrb.mxu3 %v3448_v39  ;;  %v3367_v35 = vld [vmem:[#allocation7 + $0x348] sm:$0xf]  ;;  %v3240_v39 = vor.u32 %v4176_v34, %v3239_v33  ;;  %v4324_v3 = vld [vmem:[#allocation7 + $0x6f4] sm:$0xf0] }
  0xc3   :  { %2177 = vmatmul.bf16.vlgmr.msra.gmra.mxu3 %v4713_v16  ;;  %v3368_v43 = vor.u32 %v4208_v36, %v3367_v35  ;;  %v3559_v15 = vld [vmem:[#allocation7 + $0x4c8] sm:$0xf]  ;;  %v4256_v17 = vld [vmem:[#allocation7 + $0x4d4] sm:$0xf0] }
  0xc4   :  { %2184 = vmatpush.bf16.msrb.mxu0 %v3048_v45  ;;  %v3223_v45 = vld [vmem:[#allocation7 + $0x228] sm:$0xf]  ;;  %v4288_v20 = vld [vmem:[#allocation7 + $0x5d4] sm:$0xf0]  ;;  %v3560_v26 = vor.u32 %v4256_v17, %v3559_v15 }
  0xc5   :  { %2198 = vmatpush.bf16.msrb.mxu1 %v3176_v46  ;;  %v4172_v46 = vld [vmem:[#allocation7 + $0x234] sm:$0xf0]  ;;  %v3687_v18 = vld [vmem:[#allocation7 + $0x5c8] sm:$0xf] }
  0xc6   :  { %2212 = vmatpush.bf16.msrb.mxu2 %v3304_v47  ;;  %2226 = vmatpush.bf16.msrb.mxu3 %v3432_v51  ;;  %v3351_v47 = vld [vmem:[#allocation7 + $0x328] sm:$0xf]  ;;  %v4104_v51 = vld [vmem:[#allocation7 + $0x14] sm:$0xf0]  ;;  %v3224_v53 = vor.u32 %v4172_v46, %v3223_v45  ;;  %v3688_v27 = vor.u32 %v4288_v20, %v3687_v18 }
  0xc7   :  { %v2952_v0 = vor.u32 %v4104_v51, %v2951_v50  ;;  %v4352_v25 = vld [vmem:[#allocation7 + $0x7d4] sm:$0xf0]  ;;  %v3543_v31 = vld [vmem:[#allocation7 + $0x4a8] sm:$0xf] }
  0xc8   :  { %2185 = vmatpush.bf16.msrb.mxu0 %v3032_v57  ;;  %v3352_v57 = vor.u32 %v4204_v48, %v3351_v47  ;;  %v4252_v33 = vld [vmem:[#allocation7 + $0x4b4] sm:$0xf0]  ;;  %v3671_v34 = vld [vmem:[#allocation7 + $0x5a8] sm:$0xf] }
  0xc9   :  { %2199 = vmatpush.bf16.msrb.mxu1 %v3160_v58  ;;  %v4168_v58 = vld [vmem:[#allocation7 + $0x214] sm:$0xf0]  ;;  %v3544_v41 = vor.u32 %v4252_v33, %v3543_v31  ;;  %v3527_v44 = vld [vmem:[#allocation7 + $0x488] sm:$0xf] }
  0xca   :  { %2213 = vmatpush.bf16.msrb.mxu2 %v3288_v59  ;;  %2227 = vmatpush.bf16.msrb.mxu3 %v3416_v63  ;;  %v3335_v59 = vld [vmem:[#allocation7 + $0x308] sm:$0xf]  ;;  %v4284_v36 = vld [vmem:[#allocation7 + $0x5b4] sm:$0xf0] }
  0xcb   :  { %v3703_v63 = vld [vmem:[#allocation7 + $0x5e8] sm:$0xf]  ;;  %v3336_v9 = vor.u32 %v4200_v60, %v3335_v59  ;;  %v4348_v40 = vld [vmem:[#allocation7 + $0x7b4] sm:$0xf0]  ;;  %v3672_v42 = vor.u32 %v4284_v36, %v3671_v34 }
  0xcc   :  { %2186 = vmatpush.bf16.msrb.mxu0 %v3016_v5  ;;  %v3208_v5 = vor.u32 %v4168_v58, %v3207_v56  ;;  %v3704_v11 = vor.u32 %v4292_v1, %v3703_v63  ;;  %v4248_v45 = vld [vmem:[#allocation7 + $0x494] sm:$0xf0]  ;;  %v3655_v46 = vld [vmem:[#allocation7 + $0x588] sm:$0xf] }
  0xcd   :  { %2200 = vmatpush.bf16.msrb.mxu1 %v3144_v6  ;;  %v3959_v6 = vld [vmem:[#allocation7 + $0x7e8] sm:$0xf]  ;;  %v4280_v48 = vld [vmem:[#allocation7 + $0x594] sm:$0xf0] }
  0xce   :  { %2214 = vmatpush.bf16.msrb.mxu2 %v3272_v7  ;;  %2228 = vmatpush.bf16.msrb.mxu3 %v3400_v14  ;;  %v4356_v7 = vld [vmem:[#allocation7 + $0x7f4] sm:$0xf0]  ;;  %v3832_v14 = vor.u32 %v4324_v3, %v3831_v2  ;;  %v3911_v51 = vld [vmem:[#allocation7 + $0x788] sm:$0xf]  ;;  %v3656_v54 = vor.u32 %v4280_v48, %v3655_v46  ;;  %v4130_v46 = vld [vmem:[#allocation7 + $0xec] sm:$0xf] }
  0xcf   :  { %v3960_v19 = vor.u32 %v4356_v7, %v3959_v6  ;;  %v4312_v50 = vld [vmem:[#allocation7 + $0x694] sm:$0xf0]  ;;  %v3511_v56 = vld [vmem:[#allocation7 + $0x468] sm:$0xf]  ;;  %v4162_v48 = vld [vmem:[#allocation7 + $0x1ec] sm:$0xf] }
  0xd0   :  { %2187 = vmatpush.bf16.msrb.mxu0 %v3000_v21  ;;  %v3815_v21 = vld [vmem:[#allocation7 + $0x6c8] sm:$0xf]  ;;  %v4276_v60 = vld [vmem:[#allocation7 + $0x574] sm:$0xf0] }
  0xd1   :  { %2201 = vmatpush.bf16.msrb.mxu1 %v3128_v22  ;;  %v4320_v22 = vld [vmem:[#allocation7 + $0x6d4] sm:$0xf0]  ;;  %v3639_v58 = vld [vmem:[#allocation7 + $0x568] sm:$0xf] }
  0xd2   :  { %2215 = vmatpush.bf16.msrb.mxu2 %v3256_v23  ;;  %2229 = vmatpush.bf16.msrb.mxu3 %v3384_v30  ;;  %v3943_v23 = vld [vmem:[#allocation7 + $0x7c8] sm:$0xf]  ;;  %v3816_v30 = vor.u32 %v4320_v22, %v3815_v21  ;;  %v4308_v62 = vld [vmem:[#allocation7 + $0x674] sm:$0xf0]  ;;  %v3640_v2 = vor.u32 %v4276_v60, %v3639_v58 }
  0xd3   :  { %v3944_v35 = vor.u32 %v4352_v25, %v3943_v23  ;;  %v3767_v61 = vld [vmem:[#allocation7 + $0x668] sm:$0xf]  ;;  %v4336_v15 = vld [vmem:[#allocation7 + $0x754] sm:$0xf0] }
  0xd4   :  { %2188 = vmatpush.bf16.msrb.mxu0 %v2984_v37  ;;  %v3799_v37 = vld [vmem:[#allocation7 + $0x6a8] sm:$0xf]  ;;  %v3768_v3 = vor.u32 %v4308_v62, %v3767_v61  ;;  %v4236_v21 = vld [vmem:[#allocation7 + $0x434] sm:$0xf0]  ;;  %v4126_v62 = vld [vmem:[#allocation7 + $0xcc] sm:$0xf] }
  0xd5   :  { %2202 = vmatpush.bf16.msrb.mxu1 %v3112_v38  ;;  %v4316_v38 = vld [vmem:[#allocation7 + $0x6b4] sm:$0xf0]  ;;  %v3895_v63 = vld [vmem:[#allocation7 + $0x768] sm:$0xf] }
  0xd6   :  { %2216 = vmatpush.bf16.msrb.mxu2 %v3240_v39  ;;  %2230 = vmatpush.bf16.msrb.mxu3 %v3368_v43  ;;  %v3927_v39 = vld [vmem:[#allocation7 + $0x7a8] sm:$0xf]  ;;  %v3800_v43 = vor.u32 %v4316_v38, %v3799_v37  ;;  %v4268_v25 = vld [vmem:[#allocation7 + $0x534] sm:$0xf0] }
  0xd7   :  { %v3928_v47 = vor.u32 %v4348_v40, %v3927_v39  ;;  %v3623_v6 = vld [vmem:[#allocation7 + $0x548] sm:$0xf]  ;;  %v4332_v31 = vld [vmem:[#allocation7 + $0x734] sm:$0xf0] }
  0xd8   :  { %2189 = vmatpush.bf16.msrb.mxu0 %v2968_v49  ;;  %v3783_v49 = vld [vmem:[#allocation7 + $0x688] sm:$0xf]  ;;  %v4264_v39 = vld [vmem:[#allocation7 + $0x514] sm:$0xf0] }
  0xd9   :  { %2203 = vmatpush.bf16.msrb.mxu1 %v3096_v52  ;;  %v4344_v52 = vld [vmem:[#allocation7 + $0x794] sm:$0xf0]  ;;  %v3784_v55 = vor.u32 %v4312_v50, %v3783_v49  ;;  %v3479_v20 = vld [vmem:[#allocation7 + $0x428] sm:$0xf]  ;;  %v4733_v49 = vpop.f32.mrf.mxu1 }
  0xda   :  { %2217 = vmatpush.bf16.msrb.mxu2 %v3224_v53  ;;  %2231 = vmatpush.bf16.msrb.mxu3 %v3352_v57  ;;  %v3528_v53 = vor.u32 %v4248_v45, %v3527_v44  ;;  %v4244_v57 = vld [vmem:[#allocation7 + $0x474] sm:$0xf0]  ;;  %v3912_v59 = vor.u32 %v4344_v52, %v3911_v51  ;;  %v3607_v22 = vld [vmem:[#allocation7 + $0x528] sm:$0xf]  ;;  %v3480_v33 = vor.u32 %v4236_v21, %v3479_v20  ;;  %v4731_v45 = vpop.f32.mrf.mxu0  ;;  %v3193_v51 = vld [vmem:[#allocation7 + $0x1f8] sm:$0xf0] }
  0xdb   :  { %v3512_v1 = vor.u32 %v4244_v57, %v3511_v56  ;;  %v3463_v34 = vld [vmem:[#allocation7 + $0x408] sm:$0xf]  ;;  %v3608_v36 = vor.u32 %v4268_v25, %v3607_v22  ;;  %v4328_v44 = vld [vmem:[#allocation7 + $0x714] sm:$0xf0]  ;;  %v4194_v52 = vld [vmem:[#allocation7 + $0x2ec] sm:$0xf]  ;;  %v3196_v60 = vor.u32 %v4162_v48, %v3193_v51 }
  0xdc   :  { %2190 = vmatpush.bf16.msrb.mxu0 %v2952_v0  ;;  %v4340_v0 = vld [vmem:[#allocation7 + $0x774] sm:$0xf0]  ;;  %v3591_v38 = vld [vmem:[#allocation7 + $0x508] sm:$0xf]  ;;  %v4226_v56 = vld [vmem:[#allocation7 + $0x3ec] sm:$0xf] }
  0xdd   :  { %2204 = vmatpush.bf16.msrb.mxu1 %v3080_v4  ;;  %v3495_v4 = vld [vmem:[#allocation7 + $0x448] sm:$0xf]  ;;  %v3896_v7 = vor.u32 %v4340_v0, %v3895_v63  ;;  %v3449_v57 = vld [vmem:[#allocation7 + $0x3f8] sm:$0xf0]  ;;  %v4158_v0 = vld [vmem:[#allocation7 + $0x1cc] sm:$0xf] }
  0xde   :  { %2218 = vmatpush.bf16.msrb.mxu2 %v3208_v5  ;;  %2232 = vmatpush.bf16.msrb.mxu3 %v3336_v9  ;;  %v4240_v5 = vld [vmem:[#allocation7 + $0x454] sm:$0xf0]  ;;  %v3719_v40 = vld [vmem:[#allocation7 + $0x608] sm:$0xf]  ;;  %v3049_v63 = vld [vmem:[#allocation7 + $0xd8] sm:$0xf0] }
  0xdf   :  { %2191 = vmatmul.bf16.vlgmr.msrb.gmra.mxu0 %v4695_v24  ;;  %v4272_v9 = vld [vmem:[#allocation7 + $0x554] sm:$0xf0]  ;;  %v3496_v17 = vor.u32 %v4240_v5, %v3495_v4  ;;  %v3305_v4 = vld [vmem:[#allocation7 + $0x2d8] sm:$0xf0]  ;;  %v4222_v5 = vld [vmem:[#allocation7 + $0x3cc] sm:$0xf] }
  0xe0   :  { %2239 = vmatpush.bf16.msra.mxu0 %v3576_v10  ;;  %2205 = vmatmul.bf16.vlgmr.msrb.gmra.mxu1 %v4699_v29  ;;  %v3751_v10 = vld [vmem:[#allocation7 + $0x648] sm:$0xf]  ;;  %v3624_v18 = vor.u32 %v4272_v9, %v3623_v6  ;;  %v3433_v6 = vld [vmem:[#allocation7 + $0x3d8] sm:$0xf0]  ;;  %v3052_v9 = vor.u32 %v4126_v62, %v3049_v63  ;;  %v4186_v21 = vld [vmem:[#allocation7 + $0x2ac] sm:$0xf] }
  0xe1   :  { %2253 = vmatpush.bf16.msra.mxu1 %v3704_v11  ;;  %2219 = vmatmul.bf16.vlgmr.msrb.gmra.mxu2 %v4697_v28  ;;  %v4304_v11 = vld [vmem:[#allocation7 + $0x654] sm:$0xf0]  ;;  %v3161_v20 = vld [vmem:[#allocation7 + $0x1b8] sm:$0xf0]  ;;  %v4218_v25 = vld [vmem:[#allocation7 + $0x3ac] sm:$0xf] }
  0xe2   :  { %2267 = vmatpush.bf16.msra.mxu2 %v3832_v14  ;;  %2281 = vmatpush.bf16.msra.mxu3 %v3960_v19  ;;  %v3879_v14 = vld [vmem:[#allocation7 + $0x748] sm:$0xf]  ;;  %v3752_v19 = vor.u32 %v4304_v11, %v3751_v10  ;;  %v4737_v10 = vpop.f32.mrf.mxu3  ;;  %v3289_v22 = vld [vmem:[#allocation7 + $0x2b8] sm:$0xf0]  ;;  %v4110_v63 = vld [vmem:[#allocation7 + $0x4c] sm:$0xf] }
  0xe3   :  { %2233 = vmatmul.bf16.vlgmr.msrb.gmra.mxu3 %v4701_v32  ;;  %v3880_v23 = vor.u32 %v4336_v15, %v3879_v14  ;;  %v4122_v15 = vld [vmem:[#allocation7 + $0xac] sm:$0xf]  ;;  %v3001_v48 = vld [vmem:[#allocation7 + $0x78] sm:$0xf0] }
  0xe4   :  { %2240 = vmatpush.bf16.msra.mxu0 %v3560_v26  ;;  %v3735_v26 = vld [vmem:[#allocation7 + $0x628] sm:$0xf] }
  0xe5   :  { %2254 = vmatpush.bf16.msra.mxu1 %v3688_v27  ;;  %v4300_v27 = vld [vmem:[#allocation7 + $0x634] sm:$0xf0] }
  0xe6   :  { %2268 = vmatpush.bf16.msra.mxu2 %v3816_v30  ;;  %2282 = vmatpush.bf16.msra.mxu3 %v3944_v35  ;;  %v3863_v30 = vld [vmem:[#allocation7 + $0x728] sm:$0xf]  ;;  %v4232_v35 = vld [vmem:[#allocation7 + $0x414] sm:$0xf0]  ;;  %v3736_v37 = vor.u32 %v4300_v27, %v3735_v26  ;;  %v3417_v26 = vld [vmem:[#allocation7 + $0x3b8] sm:$0xf0]  ;;  %v4744_v27 = vpop.f32.mrf.mxu1 }
  0xe7   :  { %v3464_v50 = vor.u32 %v4232_v35, %v3463_v34  ;;  %v4118_v34 = vld [vmem:[#allocation7 + $0x8c] sm:$0xf]  ;;  %v3017_v35 = vld [vmem:[#allocation7 + $0x98] sm:$0xf0] }
  0xe8   :  { %2241 = vmatpush.bf16.msra.mxu0 %v3544_v41  ;;  %v3864_v41 = vor.u32 %v4332_v31, %v3863_v30 }
  0xe9   :  { %2255 = vmatpush.bf16.msra.mxu1 %v3672_v42  ;;  %v4296_v42 = vld [vmem:[#allocation7 + $0x614] sm:$0xf0] }
  0xea   :  { %2269 = vmatpush.bf16.msra.mxu2 %v3800_v43  ;;  %2283 = vmatpush.bf16.msra.mxu3 %v3928_v47  ;;  %v3847_v43 = vld [vmem:[#allocation7 + $0x708] sm:$0xf]  ;;  %v3065_v47 = vld [vmem:[#allocation7 + $0xf8] sm:$0xf0] }
  0xeb   :  { %v3848_v58 = vor.u32 %v4328_v44, %v3847_v43  ;;  %v3020_v43 = vor.u32 %v4118_v34, %v3017_v35  ;;  %v4102_v35 = vld [vmem:[#allocation7 + $0xc] sm:$0xf] }
  0xec   :  { %2242 = vmatpush.bf16.msra.mxu0 %v3528_v53  ;;  %v3321_v53 = vld [vmem:[#allocation7 + $0x2f8] sm:$0xf0] }
  0xed   :  { %2256 = vmatpush.bf16.msra.mxu1 %v3656_v54  ;;  %v3592_v54 = vor.u32 %v4264_v39, %v3591_v38  ;;  %v3324_v61 = vor.u32 %v4194_v52, %v3321_v53  ;;  %v3145_v38 = vld [vmem:[#allocation7 + $0x198] sm:$0xf0]  ;;  %v4182_v39 = vld [vmem:[#allocation7 + $0x28c] sm:$0xf] }
  0xee   :  { %2270 = vmatpush.bf16.msra.mxu2 %v3784_v55  ;;  %2284 = vmatpush.bf16.msra.mxu3 %v3912_v59  ;;  %v3720_v55 = vor.u32 %v4296_v42, %v3719_v40  ;;  %v3068_v59 = vor.u32 %v4130_v46, %v3065_v47  ;;  %v3273_v40 = vld [vmem:[#allocation7 + $0x298] sm:$0xf0]  ;;  %v4114_v47 = vld [vmem:[#allocation7 + $0x6c] sm:$0xf] }
  0xef   :  { %v3401_v42 = vld [vmem:[#allocation7 + $0x398] sm:$0xf0]  ;;  %v3276_v46 = vor.u32 %v4182_v39, %v3273_v40  ;;  %v4134_v40 = vld [vmem:[#allocation7 + $0x10c] sm:$0xf] }
  0xf0   :  { %2243 = vmatpush.bf16.msra.mxu0 %v3512_v1  ;;  %v3452_v1 = vor.u32 %v4226_v56, %v3449_v57  ;;  %v3129_v53 = vld [vmem:[#allocation7 + $0x178] sm:$0xf0]  ;;  %v4749_v56 = vpop.f32.mrf.mxu3  ;;  %v4210_v57 = vld [vmem:[#allocation7 + $0x36c] sm:$0xf] }
  0xf1   :  { %2257 = vmatpush.bf16.msra.mxu1 %v3640_v2  ;;  %v3177_v2 = vld [vmem:[#allocation7 + $0x1d8] sm:$0xf0] }
  0xf2   :  { %2271 = vmatpush.bf16.msra.mxu2 %v3768_v3  ;;  %2285 = vmatpush.bf16.msra.mxu3 %v3896_v7  ;;  %v4190_v3 = vld [vmem:[#allocation7 + $0x2cc] sm:$0xf]  ;;  %v4735_v7 = vpop.f32.mrf.mxu2  ;;  %v3180_v11 = vor.u32 %v4158_v0, %v3177_v2  ;;  %v2985_v0 = vld [vmem:[#allocation7 + $0x58] sm:$0xf0]  ;;  %v4753_v2 = vpop.f32.mrf.mxu1 }
  0xf3   :  { %v3308_v14 = vor.u32 %v4190_v3, %v3305_v4  ;;  %v3113_v4 = vld [vmem:[#allocation7 + $0x158] sm:$0xf0] }
  0xf4   :  { %2244 = vmatpush.bf16.msra.mxu0 %v3496_v17  ;;  %v3033_v17 = vld [vmem:[#allocation7 + $0xb8] sm:$0xf0] }
  0xf5   :  { %2258 = vmatpush.bf16.msra.mxu1 %v3624_v18  ;;  %v4154_v18 = vld [vmem:[#allocation7 + $0x1ac] sm:$0xf]  ;;  %v3036_v30 = vor.u32 %v4122_v15, %v3033_v17 }
  0xf6   :  { %2272 = vmatpush.bf16.msra.mxu2 %v3752_v19  ;;  %2286 = vmatpush.bf16.msra.mxu3 %v3880_v23  ;;  %v3436_v19 = vor.u32 %v4222_v5, %v3433_v6  ;;  %v4740_v23 = vpop.f32.mrf.mxu0  ;;  %v3164_v31 = vor.u32 %v4154_v18, %v3161_v20  ;;  %v4174_v5 = vld [vmem:[#allocation7 + $0x24c] sm:$0xf]  ;;  %v3241_v6 = vld [vmem:[#allocation7 + $0x258] sm:$0xf0] }
  0xf7   :  { %v3244_v17 = vor.u32 %v4174_v5, %v3241_v6  ;;  %v4106_v18 = vld [vmem:[#allocation7 + $0x2c] sm:$0xf] }
  0xf8   :  { %2245 = vmatpush.bf16.msra.mxu0 %v3480_v33  ;;  %v3292_v33 = vor.u32 %v4186_v21, %v3289_v22  ;;  %v4138_v20 = vld [vmem:[#allocation7 + $0x12c] sm:$0xf]  ;;  %v3097_v22 = vld [vmem:[#allocation7 + $0x138] sm:$0xf0] }
  0xf9   :  { %2259 = vmatpush.bf16.msra.mxu1 %v3608_v36  ;;  %v4150_v36 = vld [vmem:[#allocation7 + $0x18c] sm:$0xf] }
  0xfa   :  { %2273 = vmatpush.bf16.msra.mxu2 %v3736_v37  ;;  %2287 = vmatpush.bf16.msra.mxu3 %v3864_v41  ;;  %v3420_v37 = vor.u32 %v4218_v25, %v3417_v26  ;;  %v4214_v41 = vld [vmem:[#allocation7 + $0x38c] sm:$0xf]  ;;  %v3148_v44 = vor.u32 %v4150_v36, %v3145_v38  ;;  %v4747_v51 = vpop.f32.mrf.mxu2  ;;  %v3225_v26 = vld [vmem:[#allocation7 + $0x238] sm:$0xf0]  ;;  %v3100_v38 = vor.u32 %v4138_v20, %v3097_v22 }
  0xfb   :  { %v3404_v52 = vor.u32 %v4214_v41, %v3401_v42  ;;  %v4170_v25 = vld [vmem:[#allocation7 + $0x22c] sm:$0xf]  ;;  %v2953_v36 = vld [vmem:[#allocation7 + $0x18] sm:$0xf0] }
  0xfc   :  { %2246 = vmatpush.bf16.msra.mxu0 %v3464_v50  ;;  %v4146_v50 = vld [vmem:[#allocation7 + $0x16c] sm:$0xf]  ;;  %v3228_v39 = vor.u32 %v4170_v25, %v3225_v26  ;;  %v3081_v41 = vld [vmem:[#allocation7 + $0x118] sm:$0xf0] }
  0xfd   :  { %2260 = vmatpush.bf16.msra.mxu1 %v3592_v54  ;;  %v4178_v54 = vld [vmem:[#allocation7 + $0x26c] sm:$0xf]  ;;  %v3945_v20 = vld [vmem:[#allocation7 + $0x7d8] sm:$0xf0] }
  0xfe   :  { %2274 = vmatpush.bf16.msra.mxu2 %v3720_v55  ;;  %2288 = vmatpush.bf16.msra.mxu3 %v3848_v58  ;;  %v3257_v55 = vld [vmem:[#allocation7 + $0x278] sm:$0xf0]  ;;  %v4166_v42 = vld [vmem:[#allocation7 + $0x20c] sm:$0xf] }
  0xff   :  { %2247 = vmatmul.bf16.vlgmr.msra.gmra.mxu0 %v4707_v8  ;;  %v3385_v58 = vld [vmem:[#allocation7 + $0x378] sm:$0xf0]  ;;  %v3260_v62 = vor.u32 %v4178_v54, %v3257_v55  ;;  %v4761_v54 = vpop.f32.mrf.mxu1  ;;  %v2956_v55 = vor.u32 %v4102_v35, %v2953_v36  ;;  %v4254_v6 = vld [vmem:[#allocation7 + $0x4cc] sm:$0xf] }
 0x100   :  { %2295 = vmatpush.bf16.msrb.mxu0 %v3068_v59  ;;  %2261 = vmatmul.bf16.vlgmr.msra.gmra.mxu1 %v4711_v13  ;;  %v3004_v59 = vor.u32 %v4114_v47, %v3001_v48  ;;  %v3388_v3 = vor.u32 %v4210_v57, %v3385_v58  ;;  %v3337_v47 = vld [vmem:[#allocation7 + $0x318] sm:$0xf0]  ;;  %v4322_v58 = vld [vmem:[#allocation7 + $0x6ec] sm:$0xf] }
 0x101   :  { %2309 = vmatpush.bf16.msrb.mxu1 %v3196_v60  ;;  %2275 = vmatmul.bf16.vlgmr.msra.gmra.mxu2 %v4709_v12  ;;  %v4751_v60 = vpop.f32.mrf.mxu0  ;;  %v3705_v57 = vld [vmem:[#allocation7 + $0x5f8] sm:$0xf0]  ;;  %v4282_v36 = vld [vmem:[#allocation7 + $0x5ac] sm:$0xf] }
 0x102   :  { %2323 = vmatpush.bf16.msrb.mxu2 %v3324_v61  ;;  %2337 = vmatpush.bf16.msrb.mxu3 %v3452_v1  ;;  %v3132_v61 = vor.u32 %v4146_v50, %v3129_v53  ;;  %v4142_v1 = vld [vmem:[#allocation7 + $0x14c] sm:$0xf]  ;;  %v3545_v35 = vld [vmem:[#allocation7 + $0x4b8] sm:$0xf0] }
 0x103   :  { %2289 = vmatmul.bf16.vlgmr.msra.gmra.mxu3 %v4713_v16  ;;  %v3116_v15 = vor.u32 %v4142_v1, %v3113_v4  ;;  %v4258_v50 = vld [vmem:[#allocation7 + $0x4ec] sm:$0xf] }
 0x104   :  { %2296 = vmatpush.bf16.msrb.mxu0 %v3052_v9  ;;  %v4206_v9 = vld [vmem:[#allocation7 + $0x34c] sm:$0xf] }
 0x105   :  { %2310 = vmatpush.bf16.msrb.mxu1 %v3180_v11  ;;  %v3369_v11 = vld [vmem:[#allocation7 + $0x358] sm:$0xf0]  ;;  %v4290_v53 = vld [vmem:[#allocation7 + $0x5ec] sm:$0xf] }
 0x106   :  { %2324 = vmatpush.bf16.msrb.mxu2 %v3308_v14  ;;  %2338 = vmatpush.bf16.msrb.mxu3 %v3436_v19  ;;  %v2988_v14 = vor.u32 %v4110_v63, %v2985_v0  ;;  %v2969_v19 = vld [vmem:[#allocation7 + $0x38] sm:$0xf0]  ;;  %v3372_v21 = vor.u32 %v4206_v9, %v3369_v11  ;;  %v4354_v63 = vld [vmem:[#allocation7 + $0x7ec] sm:$0xf]  ;;  %v3708_v4 = vor.u32 %v4290_v53, %v3705_v57 }
 0x107   :  { %v2972_v34 = vor.u32 %v4106_v18, %v2969_v19  ;;  %v3961_v0 = vld [vmem:[#allocation7 + $0x7f8] sm:$0xf0]  ;;  %v4286_v11 = vld [vmem:[#allocation7 + $0x5cc] sm:$0xf] }
 0x108   :  { %2297 = vmatpush.bf16.msrb.mxu0 %v3036_v30  ;;  %v4202_v30 = vld [vmem:[#allocation7 + $0x32c] sm:$0xf]  ;;  %v3561_v9 = vld [vmem:[#allocation7 + $0x4d8] sm:$0xf0] }
 0x109   :  { %2311 = vmatpush.bf16.msrb.mxu1 %v3164_v31  ;;  %v3353_v31 = vld [vmem:[#allocation7 + $0x338] sm:$0xf0]  ;;  %v4759_v48 = vpop.f32.mrf.mxu0  ;;  %v4350_v19 = vld [vmem:[#allocation7 + $0x7cc] sm:$0xf]  ;;  %v3564_v22 = vor.u32 %v4254_v6, %v3561_v9 }
 0x10a   :  { %2325 = vmatpush.bf16.msrb.mxu2 %v3292_v33  ;;  %2339 = vmatpush.bf16.msrb.mxu3 %v3420_v37  ;;  %v4755_v33 = vpop.f32.mrf.mxu2  ;;  %v4757_v37 = vpop.f32.mrf.mxu3  ;;  %v3817_v18 = vld [vmem:[#allocation7 + $0x6d8] sm:$0xf0]  ;;  %v4278_v53 = vld [vmem:[#allocation7 + $0x58c] sm:$0xf] }
 0x10b   :  { %v3657_v57 = vld [vmem:[#allocation7 + $0x598] sm:$0xf0]  ;;  %v4306_v9 = vld [vmem:[#allocation7 + $0x66c] sm:$0xf] }
 0x10c   :  { %2298 = vmatpush.bf16.msrb.mxu0 %v3020_v43  ;;  %v3356_v43 = vor.u32 %v4202_v30, %v3353_v31  ;;  %v3641_v6 = vld [vmem:[#allocation7 + $0x578] sm:$0xf0] }
 0x10d   :  { %2312 = vmatpush.bf16.msrb.mxu1 %v3148_v44  ;;  %v3209_v44 = vld [vmem:[#allocation7 + $0x218] sm:$0xf0] }
 0x10e   :  { %2326 = vmatpush.bf16.msrb.mxu2 %v3276_v46  ;;  %2340 = vmatpush.bf16.msrb.mxu3 %v3404_v52  ;;  %v4198_v46 = vld [vmem:[#allocation7 + $0x30c] sm:$0xf]  ;;  %v3577_v52 = vld [vmem:[#allocation7 + $0x4f8] sm:$0xf0] }
 0x10f   :  { %v3340_v1 = vor.u32 %v4198_v46, %v3337_v47 }
 0x110   :  { %2299 = vmatpush.bf16.msrb.mxu0 %v3004_v59  ;;  %v3833_v59 = vld [vmem:[#allocation7 + $0x6f8] sm:$0xf0] }
 0x111   :  { %2313 = vmatpush.bf16.msrb.mxu1 %v3132_v61  ;;  %v3084_v61 = vor.u32 %v4134_v40, %v3081_v41  ;;  %v3836_v5 = vor.u32 %v4322_v58, %v3833_v59  ;;  %v4767_v26 = vpop.f32.mrf.mxu0  ;;  %v3673_v40 = vld [vmem:[#allocation7 + $0x5b8] sm:$0xf0]  ;;  %v4314_v41 = vld [vmem:[#allocation7 + $0x6ac] sm:$0xf] }
 0x112   :  { %2327 = vmatpush.bf16.msrb.mxu2 %v3260_v62  ;;  %2341 = vmatpush.bf16.msrb.mxu3 %v3388_v3  ;;  %v3212_v62 = vor.u32 %v4166_v42, %v3209_v44  ;;  %v3580_v3 = vor.u32 %v4258_v50, %v3577_v52  ;;  %v4765_v25 = vpop.f32.mrf.mxu3  ;;  %v3801_v42 = vld [vmem:[#allocation7 + $0x6b8] sm:$0xf0]  ;;  %v3676_v47 = vor.u32 %v4282_v36, %v3673_v40  ;;  %v4246_v52 = vld [vmem:[#allocation7 + $0x48c] sm:$0xf] }
 0x113   :  { %v3929_v44 = vld [vmem:[#allocation7 + $0x7b8] sm:$0xf0]  ;;  %v3804_v50 = vor.u32 %v4314_v41, %v3801_v42  ;;  %v4310_v58 = vld [vmem:[#allocation7 + $0x68c] sm:$0xf] }
 0x114   :  { %2300 = vmatpush.bf16.msrb.mxu0 %v2988_v14  ;;  %v3964_v14 = vor.u32 %v4354_v63, %v3961_v0  ;;  %v4342_v59 = vld [vmem:[#allocation7 + $0x78c] sm:$0xf]  ;;  %v3660_v63 = vor.u32 %v4278_v53, %v3657_v57  ;;  %v3625_v36 = vld [vmem:[#allocation7 + $0x558] sm:$0xf0] }
 0x115   :  { %2314 = vmatpush.bf16.msrb.mxu1 %v3116_v15  ;;  %v3689_v15 = vld [vmem:[#allocation7 + $0x5d8] sm:$0xf0]  ;;  %v4334_v41 = vld [vmem:[#allocation7 + $0x74c] sm:$0xf] }
 0x116   :  { %2328 = vmatpush.bf16.msrb.mxu2 %v3244_v17  ;;  %2342 = vmatpush.bf16.msrb.mxu3 %v3372_v21  ;;  %v4318_v17 = vld [vmem:[#allocation7 + $0x6cc] sm:$0xf]  ;;  %v4763_v21 = vpop.f32.mrf.mxu2  ;;  %v3692_v30 = vor.u32 %v4286_v11, %v3689_v15  ;;  %v3769_v11 = vld [vmem:[#allocation7 + $0x678] sm:$0xf0] }
 0x117   :  { %v3820_v31 = vor.u32 %v4318_v17, %v3817_v18  ;;  %v4338_v15 = vld [vmem:[#allocation7 + $0x76c] sm:$0xf]  ;;  %v3897_v17 = vld [vmem:[#allocation7 + $0x778] sm:$0xf0] }
 0x118   :  { %2301 = vmatpush.bf16.msrb.mxu0 %v2972_v34  ;;  %v4250_v34 = vld [vmem:[#allocation7 + $0x4ac] sm:$0xf]  ;;  %v3753_v40 = vld [vmem:[#allocation7 + $0x658] sm:$0xf0] }
 0x119   :  { %2315 = vmatpush.bf16.msrb.mxu1 %v3100_v38  ;;  %v4769_v38 = vpop.f32.mrf.mxu1  ;;  %v3548_v46 = vor.u32 %v4250_v34, %v3545_v35  ;;  %v4270_v34 = vld [vmem:[#allocation7 + $0x54c] sm:$0xf]  ;;  %v3900_v35 = vor.u32 %v4338_v15, %v3897_v17  ;;  %v3881_v42 = vld [vmem:[#allocation7 + $0x758] sm:$0xf0] }
 0x11a   :  { %2329 = vmatpush.bf16.msrb.mxu2 %v3228_v39  ;;  %2343 = vmatpush.bf16.msrb.mxu3 %v3356_v43  ;;  %v3948_v39 = vor.u32 %v4350_v19, %v3945_v20  ;;  %v4346_v43 = vld [vmem:[#allocation7 + $0x7ac] sm:$0xf]  ;;  %v3884_v53 = vor.u32 %v4334_v41, %v3881_v42  ;;  %v3721_v17 = vld [vmem:[#allocation7 + $0x618] sm:$0xf0] }
 0x11b   :  { %v4298_v57 = vld [vmem:[#allocation7 + $0x62c] sm:$0xf]  ;;  %v4405_v42 = vld [vmem:[#allocation11 + $0x78] sm:$0xff] }
 0x11c   :  { %2302 = vmatpush.bf16.msrb.mxu0 %v2956_v55  ;;  %v3932_v55 = vor.u32 %v4346_v43, %v3929_v44  ;;  %v3628_v44 = vor.u32 %v4270_v34, %v3625_v36  ;;  %v4294_v15 = vld [vmem:[#allocation7 + $0x60c] sm:$0xf] }
 0x11d   :  { %2316 = vmatpush.bf16.msrb.mxu1 %v3084_v61  ;;  %v3724_v34 = vor.u32 %v4294_v15, %v3721_v17 }
 0x11e   :  { %2330 = vmatpush.bf16.msrb.mxu2 %v3212_v62  ;;  %2344 = vmatpush.bf16.msrb.mxu3 %v3340_v1  ;;  %v4775_v61 = vpop.f32.mrf.mxu2  ;;  %v4777_v62 = vpop.f32.mrf.mxu3  ;;  %v4242_v1 = vld [vmem:[#allocation7 + $0x46c] sm:$0xf] }
 0x11f   :  { %2303 = vmatmul.bf16.vlgmr.msrb.gmra.mxu0 %v4695_v24  ;;  %v3529_v24 = vld [vmem:[#allocation7 + $0x498] sm:$0xf0] }
 0x120   :  { %2351 = vmatpush.bf16.msra.mxu0 %v3580_v3  ;;  %2317 = vmatmul.bf16.vlgmr.msrb.gmra.mxu1 %v4699_v29  ;;  %v3913_v29 = vld [vmem:[#allocation7 + $0x798] sm:$0xf0] }
 0x121   :  { %2365 = vmatpush.bf16.msra.mxu1 %v3708_v4  ;;  %2331 = vmatmul.bf16.vlgmr.msrb.gmra.mxu2 %v4697_v28  ;;  %v3785_v28 = vld [vmem:[#allocation7 + $0x698] sm:$0xf0]  ;;  %v4274_v4 = vld [vmem:[#allocation7 + $0x56c] sm:$0xf]  ;;  %v4781_v18 = vpop.f32.mrf.mxu1 }
 0x122   :  { %2379 = vmatpush.bf16.msra.mxu2 %v3836_v5  ;;  %2393 = vmatpush.bf16.msra.mxu3 %v3964_v14  ;;  %v3788_v0 = vor.u32 %v4310_v58, %v3785_v28  ;;  %v3513_v3 = vld [vmem:[#allocation7 + $0x478] sm:$0xf0]  ;;  %v3916_v5 = vor.u32 %v4342_v59, %v3913_v29  ;;  %v4779_v14 = vpop.f32.mrf.mxu0  ;;  %v3644_v20 = vor.u32 %v4274_v4, %v3641_v6  ;;  %v4330_v29 = vld [vmem:[#allocation7 + $0x72c] sm:$0xf] }
 0x123   :  { %2345 = vmatmul.bf16.vlgmr.msrb.gmra.mxu3 %v4701_v32  ;;  %v3532_v32 = vor.u32 %v4246_v52, %v3529_v24  ;;  %v3516_v19 = vor.u32 %v4242_v1, %v3513_v3  ;;  %v4266_v52 = vld [vmem:[#allocation7 + $0x52c] sm:$0xf]  ;;  %v3737_v58 = vld [vmem:[#allocation7 + $0x638] sm:$0xf0] }
 0x124   :  { %2352 = vmatpush.bf16.msra.mxu0 %v3564_v22  ;;  %v3772_v22 = vor.u32 %v4306_v9, %v3769_v11  ;;  %v3740_v3 = vor.u32 %v4298_v57, %v3737_v58  ;;  %v4230_v4 = vld [vmem:[#allocation7 + $0x40c] sm:$0xf]  ;;  %v3593_v11 = vld [vmem:[#allocation7 + $0x518] sm:$0xf0] }
 0x125   :  { %2366 = vmatpush.bf16.msra.mxu1 %v3692_v30  ;;  %v4238_v30 = vld [vmem:[#allocation7 + $0x44c] sm:$0xf] }
 0x126   :  { %2380 = vmatpush.bf16.msra.mxu2 %v3820_v31  ;;  %2394 = vmatpush.bf16.msra.mxu3 %v3948_v39  ;;  %v3497_v31 = vld [vmem:[#allocation7 + $0x458] sm:$0xf0]  ;;  %v4302_v39 = vld [vmem:[#allocation7 + $0x64c] sm:$0xf]  ;;  %v4783_v24 = vpop.f32.mrf.mxu2  ;;  %v4785_v28 = vpop.f32.mrf.mxu3 }
 0x127   :  { %v3500_v43 = vor.u32 %v4238_v30, %v3497_v31  ;;  %v4262_v6 = vld [vmem:[#allocation7 + $0x50c] sm:$0xf]  ;;  %v1971_v30 = vadd.f32 %v4759_v48, %v4740_v23  ;;  %v4396_v48 = vld [vmem:[#allocation11 + $0x30] sm:$0xff] }
 0x128   :  { %2353 = vmatpush.bf16.msra.mxu0 %v3548_v46  ;;  %v3756_v46 = vor.u32 %v4302_v39, %v3753_v40  ;;  %v3596_v31 = vor.u32 %v4262_v6, %v3593_v11  ;;  %v4397_v39 = vld [vmem:[#allocation11 + $0x38] sm:$0xff]  ;;  %v1969_v40 = vadd.f32 %v4751_v60, %v4731_v45  ;;  %v4404_v45 = vld [vmem:[#allocation11 + $0x70] sm:$0xff] }
 0x129   :  { %2367 = vmatpush.bf16.msra.mxu1 %v3676_v47  ;;  %v4234_v47 = vld [vmem:[#allocation7 + $0x42c] sm:$0xf]  ;;  %v4809_v11 = vld [vmem:[#allocation10] sm:$0xf] }
 0x12a   :  { %2381 = vmatpush.bf16.msra.mxu2 %v3804_v50  ;;  %2395 = vmatpush.bf16.msra.mxu3 %v3932_v55  ;;  %v3481_v50 = vld [vmem:[#allocation7 + $0x438] sm:$0xf0]  ;;  %v2080_v59 = vpop.f32.mrf.mxu0 }
 0x12b   :  { %v3609_v55 = vld [vmem:[#allocation7 + $0x538] sm:$0xf0] }
 0x12c   :  { %2354 = vmatpush.bf16.msra.mxu0 %v3532_v32  ;;  %v3865_v32 = vld [vmem:[#allocation7 + $0x738] sm:$0xf0]  ;;  %v3612_v1 = vor.u32 %v4266_v52, %v3609_v55 }
 0x12d   :  { %2368 = vmatpush.bf16.msra.mxu1 %v3660_v63  ;;  %v2094_v63 = vpop.f32.mrf.mxu1  ;;  %v3868_v9 = vor.u32 %v4330_v29, %v3865_v32 }
 0x12e   :  { %2382 = vmatpush.bf16.msra.mxu2 %v3788_v0  ;;  %2396 = vmatpush.bf16.msra.mxu3 %v3916_v5  ;;  %v3484_v0 = vor.u32 %v4234_v47, %v3481_v50  ;;  %v3465_v5 = vld [vmem:[#allocation7 + $0x418] sm:$0xf0]  ;;  %v2122_v41 = vpop.f32.mrf.mxu3  ;;  %v1983_v47 = vadd.f32 %v4753_v2, %v1969_v40 }
 0x130   :  { %2355 = vmatpush.bf16.msra.mxu0 %v3516_v19  ;;  %v4326_v19 = vld [vmem:[#allocation7 + $0x70c] sm:$0xf] }
 0x131   :  { %2369 = vmatpush.bf16.msra.mxu1 %v3644_v20  ;;  %v3849_v20 = vld [vmem:[#allocation7 + $0x718] sm:$0xf0] }
 0x132   :  { %2383 = vmatpush.bf16.msra.mxu2 %v3772_v22  ;;  %2397 = vmatpush.bf16.msra.mxu3 %v3900_v35  ;;  %v3468_v22 = vor.u32 %v4230_v4, %v3465_v5  ;;  %v2108_v35 = vpop.f32.mrf.mxu2  ;;  %v3852_v36 = vor.u32 %v4326_v19, %v3849_v20 }
 0x134   :  { %2356 = vmatpush.bf16.msra.mxu0 %v3500_v43  ;;  %v1985_v43 = vadd.f32 %v4761_v54, %v1971_v30  ;;  %v4395_v54 = vld [vmem:[#allocation11 + $0x28] sm:$0xff] }
 0x135   :  { %2370 = vmatpush.bf16.msra.mxu1 %v3628_v44  ;;  %v2081_v44 = vadd.f32 %v2080_v59, %v4733_v49  ;;  %v2096_v23 = vpop.f32.mrf.mxu1  ;;  %v1997_v49 = vadd.f32 %v4755_v33, %v1983_v47  ;;  %v4394_v33 = vld [vmem:[#allocation11 + $0x20] sm:$0xff] }
 0x136   :  { %2384 = vmatpush.bf16.msra.mxu2 %v3756_v46  ;;  %2398 = vmatpush.bf16.msra.mxu3 %v3884_v53  ;;  %v2082_v46 = vpop.f32.mrf.mxu0  ;;  %v1999_v50 = vadd.f32 %v4763_v21, %v1985_v43  ;;  %v4390_v43 = vld [vmem:[#allocation11] sm:$0xff] }
 0x137   :  { %v2095_v60 = vadd.f32 %v2094_v63, %v2081_v44  ;;  %v2083_v21 = vadd.f32 %v2082_v46, %v4744_v27  ;;  %v2011_v55 = vadd.f32 %v4757_v37, %v1997_v49 }
 0x138   :  { %2357 = vmatpush.bf16.msra.mxu0 %v3484_v0  ;;  %v2013_v52 = vadd.f32 %v4765_v25, %v1999_v50  ;;  %v4402_v25 = vld [vmem:[#allocation11 + $0x60] sm:$0xff]  ;;  %v4393_v0 = vld [vmem:[#allocation11 + $0x18] sm:$0xff] }
 0x139   :  { %2371 = vmatpush.bf16.msra.mxu1 %v3612_v1  ;;  %v2109_v2 = vadd.f32 %v2108_v35, %v2095_v60  ;;  %v2097_v29 = vadd.f32 %v2096_v23, %v2083_v21  ;;  %v4401_v1 = vld [vmem:[#allocation11 + $0x58] sm:$0xff]  ;;  %v4398_v23 = vld [vmem:[#allocation11 + $0x40] sm:$0xff] }
 0x13a   :  { %2385 = vmatpush.bf16.msra.mxu2 %v3740_v3  ;;  %2399 = vmatpush.bf16.msra.mxu3 %v3868_v9  ;;  %v2110_v53 = vpop.f32.mrf.mxu2  ;;  %v4409_v21 = vld [vmem:[#allocation11 + $0x98] sm:$0xff] }
 0x13b   :  { %v2123_v59 = vadd.f32 %v2122_v41, %v2109_v2  ;;  %v2111_v32 = vadd.f32 %v2110_v53, %v2097_v29  ;;  %v4410_v2 = vld [vmem:[#allocation11 + $0xa0] sm:$0xff] }
 0x13c   :  { %2358 = vmatpush.bf16.msra.mxu0 %v3468_v22  ;;  %v2409_v22 = vperm.slane %v4809_v11, 0 }
 0x13d   :  { %2372 = vmatpush.bf16.msra.mxu1 %v3596_v31  ;;  %v2150_v58 = vpop.f32.mrf.mxu1 }
 0x13e   :  { %2386 = vmatpush.bf16.msra.mxu2 %v3724_v34  ;;  %2400 = vmatpush.bf16.msra.mxu3 %v3852_v36  ;;  %v2136_v57 = vpop.f32.mrf.mxu0  ;;  %v2410_v34 = vperm.slane %v4809_v11, 1  ;;  %v4399_v36 = vld [vmem:[#allocation11 + $0x48] sm:$0xff] }
 0x13f   :  { %2359 = vmatmul.bf16.vlgmr.msra.gmra.mxu0 %v4707_v8  ;;  %v4403_v8 = vld [vmem:[#allocation11 + $0x68] sm:$0xff]  ;;  %v2137_v63 = vadd.f32 %v2136_v57, %v2123_v59 }
 0x140   :  { %2697 = vmatpush.bf16.msrb.mxu0 %v4397_v39  ;;  %2373 = vmatmul.bf16.vlgmr.msra.gmra.mxu1 %v4711_v13  ;;  %v2027_v13 = vadd.f32 %v4779_v14, %v2013_v52  ;;  %v4411_v52 = vld [vmem:[#allocation11 + $0xa8] sm:$0xff] }
 0x141   :  { %2711 = vmatpush.bf16.msrb.mxu1 %v4405_v42  ;;  %2387 = vmatmul.bf16.vlgmr.msra.gmra.mxu2 %v4709_v12  ;;  %v2124_v12 = vpop.f32.mrf.mxu3  ;;  %v2151_v5 = vadd.f32 %v2150_v58, %v2137_v63  ;;  %v4413_v42 = vld [vmem:[#allocation11 + $0xb8] sm:$0xff] }
 0x142   :  { %2401 = vmatmul.bf16.vlgmr.msra.gmra.mxu3 %v4713_v16  ;;  %v2025_v16 = vadd.f32 %v4767_v26, %v2011_v55  ;;  %v2041_v27 = vadd.f32 %v4781_v18, %v2027_v13  ;;  %v2125_v26 = vadd.f32 %v2124_v12, %v2111_v32  ;;  %v4392_v18 = vld [vmem:[#allocation11 + $0x10] sm:$0xff]  ;;  %2725 = vmatpush.bf16.msrb.mxu2 %v4413_v42  ;;  %v4407_v13 = vld [vmem:[#allocation11 + $0x88] sm:$0xff]  ;;  %v4417_v42 = vld [vmem:[#allocation11 + $0xd8] sm:$0xff] }
 0x143   :  { %v4408_v55 = vld [vmem:[#allocation11 + $0x90] sm:$0xff] }
 0x144   :  { %2698 = vmatpush.bf16.msrb.mxu0 %v4396_v48  ;;  %v2039_v37 = vadd.f32 %v4769_v38, %v2025_v16  ;;  %v2055_v14 = vadd.f32 %v4783_v24, %v2041_v27  ;;  %v2164_v3 = vpop.f32.mrf.mxu2  ;;  %v4400_v38 = vld [vmem:[#allocation11 + $0x50] sm:$0xff] }
 0x145   :  { %2712 = vmatpush.bf16.msrb.mxu1 %v4404_v45  ;;  %v2165_v17 = vadd.f32 %v2164_v3, %v2151_v5  ;;  %v2152_v24 = vpop.f32.mrf.mxu1  ;;  %v4412_v48 = vld [vmem:[#allocation11 + $0xb0] sm:$0xff] }
 0x146   :  { %v2053_v4 = vadd.f32 %v4775_v61, %v2039_v37  ;;  %v2138_v6 = vpop.f32.mrf.mxu0  ;;  %v2069_v15 = vadd.f32 %v4785_v28, %v2055_v14  ;;  %v4391_v61 = vld [vmem:[#allocation11 + $0x8] sm:$0xff]  ;;  %2726 = vmatpush.bf16.msrb.mxu2 %v4412_v48 }
 0x147   :  { %v2139_v19 = vadd.f32 %v2138_v6, %v2125_v26 }
 0x148   :  { %2699 = vmatpush.bf16.msrb.mxu0 %v4395_v54  ;;  %v2067_v20 = vadd.f32 %v4777_v62, %v2053_v4  ;;  %v2421_v30 = vadd.f32 %v2409_v22, %v2069_v15 }
 0x149   :  { %2713 = vmatpush.bf16.msrb.mxu1 %v4403_v8  ;;  %v2178_v9 = vpop.f32.mrf.mxu3  ;;  %v2153_v35 = vadd.f32 %v2152_v24, %v2139_v19 }
 0x14a   :  { %v2179_v31 = vadd.f32 %v2178_v9, %v2165_v17  ;;  %v2417_v28 = vadd.f32 %v2409_v22, %v2067_v20  ;;  %v2429_v44 = vmax.f32 %v2421_v30, 0.0  ;;  %2727 = vmatpush.bf16.msrb.mxu2 %v4411_v52 }
 0x14c   :  { %2700 = vmatpush.bf16.msrb.mxu0 %v4394_v33  ;;  %v2166_v39 = vpop.f32.mrf.mxu2  ;;  %v2418_v62 = vadd.f32 %v2410_v34, %v2179_v31  ;;  %v2425_v47 = vmax.f32 %v2417_v28, 0.0  ;;  %v4406_v33 = vld [vmem:[#allocation11 + $0x80] sm:$0xff] }
 0x14d   :  { %2714 = vmatpush.bf16.msrb.mxu1 %v4402_v25  ;;  %v2167_v40 = vadd.f32 %v2166_v39, %v2153_v35 }
 0x14e   :  { %v2433_v45 = vpack.c.bf16 %v2429_v44, %v2425_v47  ;;  %v2426_v49 = vmax.f32 %v2418_v62, 0.0  ;;  %2728 = vmatpush.bf16.msrb.mxu2 %v4410_v2  ;;  %v4416_v44 = vld [vmem:[#allocation11 + $0xd0] sm:$0xff]  ;;  %v4414_v47 = vld [vmem:[#allocation11 + $0xc0] sm:$0xff] }
 0x150   :  { %2701 = vmatpush.bf16.msrb.mxu0 %v4393_v0 }
 0x151   :  { %2715 = vmatpush.bf16.msrb.mxu1 %v4401_v1  ;;  %v2180_v41 = vpop.f32.mrf.mxu3 }
 0x152   :  { %v2181_v46 = vadd.f32 %v2180_v41, %v2167_v40  ;;  %2729 = vmatpush.bf16.msrb.mxu2 %v4409_v21  ;;  %v4419_v40 = vld [vmem:[#allocation11 + $0xe8] sm:$0xff]  ;;  %v4418_v41 = vld [vmem:[#allocation11 + $0xe0] sm:$0xff] }
 0x154   :  { %2702 = vmatpush.bf16.msrb.mxu0 %v4392_v18  ;;  %v2422_v50 = vadd.f32 %v2410_v34, %v2181_v46  ;;  %v4420_v34 = vld [vmem:[#allocation11 + $0xf0] sm:$0xff]  ;;  %v4415_v46 = vld [vmem:[#allocation11 + $0xc8] sm:$0xff] }
 0x155   :  { %2716 = vmatpush.bf16.msrb.mxu1 %v4400_v38  ;;  %v2411_v38 = vperm.slane %v4809_v11, 2 }
 0x156   :  { %v2430_v60 = vmax.f32 %v2422_v50, 0.0  ;;  %2730 = vmatpush.bf16.msrb.mxu2 %v4408_v55 }
 0x158   :  { %2703 = vmatpush.bf16.msrb.mxu0 %v4391_v61  ;;  %v2434_v54 = vpack.c.bf16 %v2430_v60, %v2426_v49  ;;  %v4421_v61 = vld [vmem:[#allocation11 + $0xf8] sm:$0xff] }
 0x159   :  { %2717 = vmatpush.bf16.msrb.mxu1 %v4399_v36  ;;  %2739 = vmatpush.bf16.msrb.mxu3 %v4421_v61 }
 0x15a   :  { %2731 = vmatpush.bf16.msrb.mxu2 %v4407_v13 }
 0x15c   :  { %2704 = vmatpush.bf16.msrb.mxu0 %v4390_v43  ;;  %v2192_v8 = vpop.f32.mrf.mxu0 }
 0x15d   :  { %2718 = vmatpush.bf16.msrb.mxu1 %v4398_v23  ;;  %v2206_v53 = vpop.f32.mrf.mxu1  ;;  %v2193_v58 = vadd.f32 %v2192_v8, %v4735_v7  ;;  %2740 = vmatpush.bf16.msrb.mxu3 %v4420_v34 }
 0x15e   :  { %2732 = vmatpush.bf16.msrb.mxu2 %v4406_v33 }
 0x15f   :  { %2705 = vmatmul.bf16.vlgmr.msrb.gmra.mxu0 %v2433_v45  ;;  %v2207_v29 = vadd.f32 %v2206_v53, %v2193_v58 }
 0x160   :  { %2719 = vmatmul.bf16.vlgmr.msrb.gmra.mxu1 %v2434_v54 }
 0x161   :  { %2741 = vmatpush.bf16.msrb.mxu3 %v4419_v40 }
 0x164   :  { %v2220_v12 = vpop.f32.mrf.mxu2  ;;  %v2194_v16 = vpop.f32.mrf.mxu0 }
 0x165   :  { %v2208_v59 = vpop.f32.mrf.mxu1  ;;  %v2221_v25 = vadd.f32 %v2220_v12, %v2207_v29  ;;  %v2195_v27 = vadd.f32 %v2194_v16, %v4747_v51  ;;  %2742 = vmatpush.bf16.msrb.mxu3 %v4418_v41 }
 0x166   :  { %v2234_v57 = vpop.f32.mrf.mxu3 }
 0x167   :  { %v2235_v14 = vadd.f32 %v2234_v57, %v2221_v25  ;;  %v2209_v1 = vadd.f32 %v2208_v59, %v2195_v27 }
 0x169   :  { %2743 = vmatpush.bf16.msrb.mxu3 %v4417_v42 }
 0x16c   :  { %v2222_v32 = vpop.f32.mrf.mxu2 }
 0x16d   :  { %v2223_v3 = vadd.f32 %v2222_v32, %v2209_v1  ;;  %2744 = vmatpush.bf16.msrb.mxu3 %v4416_v44 }
 0x16e   :  { %v2236_v63 = vpop.f32.mrf.mxu3 }
 0x16f   :  { %v2237_v5 = vadd.f32 %v2236_v63, %v2223_v3  ;;  %v2412_v63 = vperm.slane %v4809_v11, 3 }
 0x171   :  { %2745 = vmatpush.bf16.msrb.mxu3 %v4415_v46 }
 0x175   :  { %2746 = vmatpush.bf16.msrb.mxu3 %v4414_v47 }
 0x17c   :  { %v2248_v0 = vpop.f32.mrf.mxu0 }
 0x17d   :  { %v2262_v37 = vpop.f32.mrf.mxu1  ;;  %v2249_v4 = vadd.f32 %v2248_v0, %v2235_v14 }
 0x17f   :  { %v2263_v6 = vadd.f32 %v2262_v37, %v2249_v4 }
 0x184   :  { %v2276_v26 = vpop.f32.mrf.mxu2  ;;  %v2250_v9 = vpop.f32.mrf.mxu0 }
 0x185   :  { %v2277_v18 = vadd.f32 %v2276_v26, %v2263_v6  ;;  %v2251_v15 = vadd.f32 %v2250_v9, %v2237_v5  ;;  %v2264_v17 = vpop.f32.mrf.mxu1 }
 0x186   :  { %v2290_v7 = vpop.f32.mrf.mxu3 }
 0x187   :  { %v2291_v19 = vadd.f32 %v2290_v7, %v2277_v18  ;;  %v2265_v51 = vadd.f32 %v2264_v17, %v2251_v15  ;;  %v4437_v7 = vld [vmem:[%s4833_s6] ss:$0 sm:$0xff]  ;;  %s4629_s6 = smov 128  }
 0x189   :  { %v2419_v30 = vadd.f32 %v2411_v38, %v2291_v19 }
 0x18b   :  { %v2427_v36 = vmax.f32 %v2419_v30, 0.0 }
 0x18c   :  { %v2278_v24 = vpop.f32.mrf.mxu2 }
 0x18d   :  { %v2279_v20 = vadd.f32 %v2278_v24, %v2265_v51 }
 0x18e   :  { %v2292_v22 = vpop.f32.mrf.mxu3 }
 0x18f   :  { %v2293_v31 = vadd.f32 %v2292_v22, %v2279_v20 }
 0x191   :  { %v2423_v35 = vadd.f32 %v2411_v38, %v2293_v31 }
 0x193   :  { %v2431_v39 = vmax.f32 %v2423_v35, 0.0 }
 0x195   :  { %v2435_v28 = vpack.c.bf16 %v2431_v39, %v2427_v36 }
 0x197   :  { %2733 = vmatmul.bf16.vlgmr.msrb.gmra.mxu2 %v2435_v28 }
 0x19c   :  { %v2304_v43 = vpop.f32.mrf.mxu0 }
 0x19d   :  { %v2318_v62 = vpop.f32.mrf.mxu1  ;;  %v2305_v50 = vadd.f32 %v2304_v43, %v4737_v10 }
 0x19f   :  { %v2319_v60 = vadd.f32 %v2318_v62, %v2305_v50 }
 0x1a4   :  { %v2332_v23 = vpop.f32.mrf.mxu2  ;;  %v2306_v45 = vpop.f32.mrf.mxu0 }
 0x1a5   :  { %v2320_v49 = vpop.f32.mrf.mxu1  ;;  %v2333_v54 = vadd.f32 %v2332_v23, %v2319_v60  ;;  %v2307_v52 = vadd.f32 %v2306_v45, %v4749_v56 }
 0x1a6   :  { %v2346_v48 = vpop.f32.mrf.mxu3 }
 0x1a7   :  { %v2347_v53 = vadd.f32 %v2346_v48, %v2333_v54  ;;  %v2321_v55 = vadd.f32 %v2320_v49, %v2307_v52 }
 0x1ac   :  { %v2334_v2 = vpop.f32.mrf.mxu2 }
 0x1ad   :  { %v2335_v12 = vadd.f32 %v2334_v2, %v2321_v55 }
 0x1ae   :  { %v2348_v21 = vpop.f32.mrf.mxu3 }
 0x1af   :  { %v2349_v58 = vadd.f32 %v2348_v21, %v2335_v12 }
 0x1bc   :  { %v2360_v8 = vpop.f32.mrf.mxu0 }
 0x1bd   :  { %v2374_v13 = vpop.f32.mrf.mxu1  ;;  %v2361_v57 = vadd.f32 %v2360_v8, %v2347_v53 }
 0x1bf   :  { %v2375_v16 = vadd.f32 %v2374_v13, %v2361_v57 }
 0x1c4   :  { %v2388_v33 = vpop.f32.mrf.mxu2  ;;  %v2362_v10 = vpop.f32.mrf.mxu0 }
 0x1c5   :  { %v2402_v59 = vpop.f32.mrf.mxu3  ;;  %v2389_v29 = vadd.f32 %v2388_v33, %v2375_v16  ;;  %v2363_v25 = vadd.f32 %v2362_v10, %v2349_v58  ;;  %v2376_v27 = vpop.f32.mrf.mxu1 }
 0x1c7   :  { %v2403_v32 = vadd.f32 %v2402_v59, %v2389_v29  ;;  %v2377_v56 = vadd.f32 %v2376_v27, %v2363_v25 }
 0x1c9   :  { %v2420_v1 = vadd.f32 %v2412_v63, %v2403_v32 }
 0x1cb   :  { %v2428_v26 = vmax.f32 %v2420_v1, 0.0 }
 0x1cc   :  { %v2390_v0 = vpop.f32.mrf.mxu2 }
 0x1cd   :  { %v2391_v37 = vadd.f32 %v2390_v0, %v2377_v56  ;;  %v2404_v14 = vpop.f32.mrf.mxu3 }
 0x1cf   :  { %v2405_v3 = vadd.f32 %v2404_v14, %v2391_v37 }
 0x1d1   :  { %v2424_v4 = vadd.f32 %v2412_v63, %v2405_v3 }
 0x1d3   :  { %v2432_v5 = vmax.f32 %v2424_v4, 0.0 }
 0x1d5   :  { %v2436_v6 = vpack.c.bf16 %v2432_v5, %v2428_v26 }
 0x1d7   :  { %2747 = vmatmul.bf16.vlgmr.msrb.gmra.mxu3 %v2436_v6 }
 0x1dc   :  { %v2706_v9 = vpop.f32.mrf.mxu0 }
 0x1dd   :  { %v2720_v18 = vpop.f32.mrf.mxu1  ;;  %v2707_v17 = vadd.f32 %v4437_v7, %v2706_v9 }
 0x1df   :  { %v2721_v11 = vadd.f32 %v2720_v18, %v2707_v17 }
 0x1e4   :  { %v2708_v38 = vpop.f32.mrf.mxu0 }
 0x1e5   :  { %v2722_v20 = vpop.f32.mrf.mxu1  ;;  %v2709_v22 = vadd.f32 %v4437_v7, %v2708_v38 }
 0x1e7   :  { %v2723_v30 = vadd.f32 %v2722_v20, %v2709_v22 }
 0x21a   :  { %v2734_v15 = vpop.f32.mrf.mxu2 }
 0x21b   :  { %v2735_v19 = vadd.f32 %v2734_v15, %v2721_v11 }
 0x222   :  { %v2736_v61 = vpop.f32.mrf.mxu2 }
 0x223   :  { %v2737_v31 = vadd.f32 %v2736_v61, %v2723_v30 }
 0x25a   :  { %v2748_v51 = vpop.f32.mrf.mxu3 }
 0x25b   :  { %v2749_v24 = vadd.f32 %v2748_v51, %v2735_v19 }
 0x25d   :  { %2753 = vst [vmem:[#allocation13] sm:$0xff] %v2749_v24 }
 0x262   :  { %v2750_v34 = vpop.f32.mrf.mxu3 }
 0x263   :  { %v2751_v35 = vadd.f32 %v2750_v34, %v2737_v31 }
 0x265   :  { %2754 = vst [vmem:[#allocation13 + $0x8] sm:$0xff] %v2751_v35 }
 0x266   :  { %2767 = dma.vmem_to_hbm [thread:$0]  %s2760_s30, 256, %s2762_s1, [#allocation4], %s4629_s6, %s4629_s6, %s4630_s14  }
 0x267   :  { %4614 = dma.done.wait [#allocation4], 256  }
 0x268   :  { %4615 = vsyncadd [#allocation4], 4294967040 }
 0x269   :  { %2772 = vsyncpa [#allocation3], 1 }
 0x26a   :  { %2773 = vsyncpa [#allocation6], 1 }
 0x26b   :  { %2774 = vsyncpa [#allocation9], 1 }
 0x26c   :  { %2775 = vsyncpa [#allocation12], 1 }
 0x26d   :  { %2776 = vsyncpa [#allocation4], 1 }

</bundles_post_ra>
